<compile_context>
chip_gen: v7x
topology: tpu7x:2x2x1
jax: 0.10.0
libtpu: 0.0.40
codegen_flags: <defaults>
</compile_context>

<pallas_src>
import math
import jax
import jax.numpy as jnp
from jax import lax
from jax.experimental import pallas as pl
from jax.experimental.pallas import tpu as pltpu

# ----------------------------- synthetic config ------------------------------
B = 2          # batch
S = 8          # sequence length
H = 32         # hidden size
NH = 2         # attention heads
HD = H // NH   # head dim
I = 64         # FFN intermediate size
L = 2          # number of encoder layers
V = 64         # vocab size
MAX_POS = 16   # max position embeddings
LN_EPS = 1e-12
DTYPE = jnp.float32
MXU_DTYPE = jnp.bfloat16
ATT_SCALE = 1.0 / math.sqrt(HD)
BS = B * S     # rows of the fused activation slab
G = B * NH     # independent attention problems


# ------------------------------ kernel helpers -------------------------------
def _layernorm(x, g, b):
    mean = jnp.mean(x, axis=-1, keepdims=True)
    var = jnp.mean((x - mean) ** 2, axis=-1, keepdims=True)
    return (x - mean) * lax.rsqrt(var + LN_EPS) * g + b


def _gelu(x):
    # TODO(synk): HF BERT uses exact erf GELU; tanh approximation used (~1e-3 delta).
    return 0.5 * x * (1.0 + jnp.tanh(0.7978845608028654 * (x + 0.044715 * x * x * x)))


# --------------------------- fused encoder kernel -----------------------------
def bert_encoder_kernel(ids_ref, seg_ref, mask_ref,
                        wemb_ref, temb_ref, pemb_ref, eg_ref, eb_ref,
                        wqkv_ref, bqkv_ref, wo_ref, bo_ref, ln1g_ref, ln1b_ref,
                        w1_ref, b1_ref, w2_ref, b2_ref, ln2g_ref, ln2b_ref,
                        o_ref):
    # ---- embeddings (gathered in-kernel; no (B,S,H) HBM slabs) ----
    ids = ids_ref[...]                                                  # (BS, 1) int32
    vocab_iota = lax.broadcasted_iota(jnp.int32, (BS, V), 1)
    onehot = (ids == vocab_iota).astype(jnp.float32)                    # (BS, V)
    word = jnp.dot(onehot, wemb_ref[...],
                   preferred_element_type=jnp.float32)                  # (BS, H)

    seg = seg_ref[...].astype(jnp.float32)                              # (BS, 1) in {0,1}
    typ = temb_ref[0:1, :] * (1.0 - seg) + temb_ref[1:2, :] * seg       # (BS, H)

    pos = jnp.concatenate([pemb_ref[...]] * B, axis=0)                  # (BS, H)

    h0 = _layernorm(word + typ + pos, eg_ref[...], eb_ref[...])         # (BS, H) f32

    # ---- additive attention mask, hoisted out of the layer loop ----
    am = (1.0 - mask_ref[...]) * -10000.0                               # (B, S)
    am3 = jnp.stack([am[b:b + 1, :] for b in range(B) for _ in range(NH)])   # (G, 1, S)

    def layer_body(l, h):
        h_bf = h.astype(MXU_DTYPE)

        # Fused QKV projection: ONE matmul (attention scale already folded into wq/bq).
        qkv = jnp.dot(h_bf, wqkv_ref[l],
                      preferred_element_type=jnp.float32) + bqkv_ref[l]       # (BS, 3H)

        def head_slices(base):
            return [qkv[b * S:(b + 1) * S, base + n * HD: base + (n + 1) * HD]
                    for b in range(B) for n in range(NH)]

        q3 = jnp.stack(head_slices(0)).astype(MXU_DTYPE)                 # (G, S, HD)
        k3 = jnp.stack(head_slices(H)).astype(MXU_DTYPE)
        v3 = jnp.stack(head_slices(2 * H)).astype(MXU_DTYPE)

        # Head/batch-batched attention; softmax stats in f32.
        s = jnp.einsum('gqd,gkd->gqk', q3, k3,
                       preferred_element_type=jnp.float32)               # (G, S, S)
        s = s + am3
        s = s - jnp.max(s, axis=-1, keepdims=True)
        p = jnp.exp(s)
        p = p * pl.reciprocal(jnp.sum(p, axis=-1, keepdims=True), approx=True)
        ctx = jnp.einsum('gqk,gkd->gqd', p.astype(MXU_DTYPE), v3,
                         preferred_element_type=jnp.float32)              # (G, S, HD)

        # Concat heads back to (BS, H), then ONE (BS,H)@(H,H) output projection.
        ctx_cat = jnp.concatenate(
            [jnp.concatenate([ctx[b * NH + n] for n in range(NH)], axis=-1)
             for b in range(B)], axis=0)                                  # (BS, H)
        attn = jnp.dot(ctx_cat.astype(MXU_DTYPE), wo_ref[l],
                       preferred_element_type=jnp.float32) + bo_ref[l]

        h1 = _layernorm(attn + h, ln1g_ref[l], ln1b_ref[l])

        # FFN: bf16 MXU matmuls, f32 GELU / LayerNorm.
        inter = jnp.dot(h1.astype(MXU_DTYPE), w1_ref[l],
                        preferred_element_type=jnp.float32) + b1_ref[l]
        inter = _gelu(inter)
        ffn = jnp.dot(inter.astype(MXU_DTYPE), w2_ref[l],
                      preferred_element_type=jnp.float32) + b2_ref[l]
        return _layernorm(ffn + h1, ln2g_ref[l], ln2b_ref[l])

    h_final = lax.fori_loop(0, L, layer_body, h0, unroll=True)
    o_ref[...] = h_final.astype(o_ref.dtype)


def _full_spec(shape):
    nd = len(shape)
    return pl.BlockSpec(shape, lambda i, _nd=nd: (0,) * _nd)


def bert_encoder(ids, segs, mask_f, p):
    inputs = (ids, segs, mask_f,
              p["word_emb"], p["type_emb"], p["pos_emb_s"],
              p["emb_ln_g"], p["emb_ln_b"],
              p["wqkv"], p["bqkv"], p["wo"], p["bo"], p["ln1g"], p["ln1b"],
              p["w1"], p["b1"], p["w2"], p["b2"], p["ln2g"], p["ln2b"])
    grid_spec = pltpu.PrefetchScalarGridSpec(
        num_scalar_prefetch=0,
        grid=(1,),                                     # single step: whole batch resident
        in_specs=[_full_spec(a.shape) for a in inputs],
        out_specs=pl.BlockSpec((BS, H), lambda i: (0, 0)),
    )
    return pl.pallas_call(
        bert_encoder_kernel,
        out_shape=jax.ShapeDtypeStruct((BS, H), DTYPE),
        grid_spec=grid_spec,
        compiler_params=pltpu.CompilerParams(dimension_semantics=("arbitrary",)),
    )(*inputs)


# ------------------------------- parameter init --------------------------------
def init_params(key):
    def nrm(k, shape):
        return jax.random.normal(k, shape, dtype=DTYPE) * 0.02

    keys = jax.random.split(key, 3 + L)
    layers = []
    for l in range(L):
        lk = jax.random.split(keys[3 + l], 6)
        layers.append(dict(
            wq=nrm(lk[0], (H, H)), bq=jnp.zeros((H,), DTYPE),
            wk=nrm(lk[1], (H, H)), bk=jnp.zeros((H,), DTYPE),
            wv=nrm(lk[2], (H, H)), bv=jnp.zeros((H,), DTYPE),
            wo=nrm(lk[3], (H, H)), bo=jnp.zeros((H,), DTYPE),
            ln1g=jnp.ones((H,), DTYPE), ln1b=jnp.zeros((H,), DTYPE),
            w1=nrm(lk[4], (H, I)), b1=jnp.zeros((I,), DTYPE),
            w2=nrm(lk[5], (I, H)), b2=jnp.zeros((H,), DTYPE),
            ln2g=jnp.ones((H,), DTYPE), ln2b=jnp.zeros((H,), DTYPE),
        ))
    return dict(
        word_emb=nrm(keys[0], (V, H)),
        pos_emb=nrm(keys[1], (MAX_POS, H)),
        type_emb=nrm(keys[2], (2, H)),
        emb_ln_g=jnp.ones((H,), DTYPE),
        emb_ln_b=jnp.zeros((H,), DTYPE),
        layers=layers,
    )


def pack_params(params):
    """Stack per-layer weights over L, fuse Q|K|V, fold attention scale, cast MXU operands."""
    ls = params["layers"]

    def stack(name):
        return jnp.stack([lp[name] for lp in ls])                     # (L, ...)

    wq = stack("wq") * ATT_SCALE            # fold 1/sqrt(HD) into the q projection
    bq = stack("bq") * ATT_SCALE
    wqkv = jnp.concatenate([wq, stack("wk"), stack("wv")], axis=-1)   # (L, H, 3H)
    bqkv = jnp.concatenate([bq, stack("bk"), stack("bv")], axis=-1)   # (L, 3H)

    return dict(
        word_emb=params["word_emb"],                                  # (V, H) f32
        type_emb=params["type_emb"],                                  # (2, H) f32
        pos_emb_s=params["pos_emb"][:S],                              # (S, H) f32
        emb_ln_g=params["emb_ln_g"].reshape(1, H),
        emb_ln_b=params["emb_ln_b"].reshape(1, H),
        wqkv=wqkv.astype(MXU_DTYPE),                                  # (L, H, 3H) bf16
        bqkv=bqkv.reshape(L, 1, 3 * H),                               # (L, 1, 3H) f32
        wo=stack("wo").astype(MXU_DTYPE),                             # (L, H, H) bf16
        bo=stack("bo").reshape(L, 1, H),
        ln1g=stack("ln1g").reshape(L, 1, H), ln1b=stack("ln1b").reshape(L, 1, H),
        w1=stack("w1").astype(MXU_DTYPE), b1=stack("b1").reshape(L, 1, I),
        w2=stack("w2").astype(MXU_DTYPE), b2=stack("b2").reshape(L, 1, H),
        ln2g=stack("ln2g").reshape(L, 1, H), ln2b=stack("ln2b").reshape(L, 1, H),
    )


# --------------------------------- forward ------------------------------------
@jax.jit
def bert_forward(packed, x, segs, mask):
    """Equivalent of Bert.forward(x, segs, mask) -> top_vec (finetune=False: eval, no dropout)."""
    ids = x.reshape(BS, 1).astype(jnp.int32)          # token ids, flattened rows
    seg_ids = segs.reshape(BS, 1).astype(jnp.int32)   # token_type_ids
    mask_f = mask.astype(DTYPE)                       # (B, S) 0/1 attention mask
    out2d = bert_encoder(ids, seg_ids, mask_f, packed)   # (B*S, H)
    return out2d.reshape(B, S, H)                         # top_vec


if __name__ == "__main__":
    key = jax.random.PRNGKey(0)
    pkey, xkey, skey = jax.random.split(key, 3)

    params = init_params(pkey)
    packed = pack_params(params)

    x = jax.random.randint(xkey, (B, S), 0, V, dtype=jnp.int32)           # token ids
    segs = jax.random.randint(skey, (B, S), 0, 2, dtype=jnp.int32)        # token_type_ids
    lengths = jnp.array([S, 5], dtype=jnp.int32)
    mask = (jnp.arange(S)[None, :] < lengths[:, None]).astype(jnp.int32)  # attention_mask

    top_vec = bert_forward(packed, x, segs, mask)
    top_vec = jax.block_until_ready(top_vec)

    assert top_vec.shape == (B, S, H)
    assert bool(jnp.all(jnp.isfinite(top_vec)))
    print("KERNEL_OK")
</pallas_src>

<mosaic_0001>
module attributes {stable_mosaic.version = 11 : i64} {
  func.func @bert_encoder_kernel(%arg0: i32, %arg1: memref<16x1xi32, #tpu.memory_space<vmem>>, %arg2: memref<16x1xi32, #tpu.memory_space<vmem>>, %arg3: memref<2x8xf32, #tpu.memory_space<vmem>>, %arg4: memref<64x32xf32, #tpu.memory_space<vmem>>, %arg5: memref<2x32xf32, #tpu.memory_space<vmem>>, %arg6: memref<8x32xf32, #tpu.memory_space<vmem>>, %arg7: memref<1x32xf32, #tpu.memory_space<vmem>>, %arg8: memref<1x32xf32, #tpu.memory_space<vmem>>, %arg9: memref<2x32x96xbf16, #tpu.memory_space<vmem>>, %arg10: memref<2x1x96xf32, #tpu.memory_space<vmem>>, %arg11: memref<2x32x32xbf16, #tpu.memory_space<vmem>>, %arg12: memref<2x1x32xf32, #tpu.memory_space<vmem>>, %arg13: memref<2x1x32xf32, #tpu.memory_space<vmem>>, %arg14: memref<2x1x32xf32, #tpu.memory_space<vmem>>, %arg15: memref<2x32x64xbf16, #tpu.memory_space<vmem>>, %arg16: memref<2x1x64xf32, #tpu.memory_space<vmem>>, %arg17: memref<2x64x32xbf16, #tpu.memory_space<vmem>>, %arg18: memref<2x1x32xf32, #tpu.memory_space<vmem>>, %arg19: memref<2x1x32xf32, #tpu.memory_space<vmem>>, %arg20: memref<2x1x32xf32, #tpu.memory_space<vmem>>, %arg21: memref<16x32xf32, #tpu.memory_space<vmem>>) attributes {dimension_semantics = [#tpu.dimension_semantics<arbitrary>], iteration_bounds = array<i64: 1>, scalar_prefetch = 0 : i64, scratch_operands = 0 : i64, tpu.core_type = #tpu.core_type<tc>, window_params = [{pipeline_mode = #tpu.pipeline_mode<synchronous>, transform_indices = @transform_0, window_bounds = array<i64: 16, 1>}, {pipeline_mode = #tpu.pipeline_mode<synchronous>, transform_indices = @transform_1, window_bounds = array<i64: 16, 1>}, {pipeline_mode = #tpu.pipeline_mode<synchronous>, transform_indices = @transform_2, window_bounds = array<i64: 2, 8>}, {pipeline_mode = #tpu.pipeline_mode<synchronous>, transform_indices = @transform_3, window_bounds = array<i64: 64, 32>}, {pipeline_mode = #tpu.pipeline_mode<synchronous>, transform_indices = @transform_4, window_bounds = array<i64: 2, 32>}, {pipeline_mode = #tpu.pipeline_mode<synchronous>, transform_indices = @transform_5, window_bounds = array<i64: 8, 32>}, {pipeline_mode = #tpu.pipeline_mode<synchronous>, transform_indices = @transform_6, window_bounds = array<i64: 1, 32>}, {pipeline_mode = #tpu.pipeline_mode<synchronous>, transform_indices = @transform_7, window_bounds = array<i64: 1, 32>}, {pipeline_mode = #tpu.pipeline_mode<synchronous>, transform_indices = @transform_8, window_bounds = array<i64: 2, 32, 96>}, {pipeline_mode = #tpu.pipeline_mode<synchronous>, transform_indices = @transform_9, window_bounds = array<i64: 2, 1, 96>}, {pipeline_mode = #tpu.pipeline_mode<synchronous>, transform_indices = @transform_10, window_bounds = array<i64: 2, 32, 32>}, {pipeline_mode = #tpu.pipeline_mode<synchronous>, transform_indices = @transform_11, window_bounds = array<i64: 2, 1, 32>}, {pipeline_mode = #tpu.pipeline_mode<synchronous>, transform_indices = @transform_12, window_bounds = array<i64: 2, 1, 32>}, {pipeline_mode = #tpu.pipeline_mode<synchronous>, transform_indices = @transform_13, window_bounds = array<i64: 2, 1, 32>}, {pipeline_mode = #tpu.pipeline_mode<synchronous>, transform_indices = @transform_14, window_bounds = array<i64: 2, 32, 64>}, {pipeline_mode = #tpu.pipeline_mode<synchronous>, transform_indices = @transform_15, window_bounds = array<i64: 2, 1, 64>}, {pipeline_mode = #tpu.pipeline_mode<synchronous>, transform_indices = @transform_16, window_bounds = array<i64: 2, 64, 32>}, {pipeline_mode = #tpu.pipeline_mode<synchronous>, transform_indices = @transform_17, window_bounds = array<i64: 2, 1, 32>}, {pipeline_mode = #tpu.pipeline_mode<synchronous>, transform_indices = @transform_18, window_bounds = array<i64: 2, 1, 32>}, {pipeline_mode = #tpu.pipeline_mode<synchronous>, transform_indices = @transform_19, window_bounds = array<i64: 2, 1, 32>}, {pipeline_mode = #tpu.pipeline_mode<synchronous>, transform_indices = @transform_20, window_bounds = array<i64: 16, 32>}]} {
    %c0 = arith.constant 0 : index
    %c0_0 = arith.constant 0 : index
    %0 = vector.load %arg1[%c0, %c0_0] : memref<16x1xi32, #tpu.memory_space<vmem>>, vector<16x1xi32>
    %1 = tpu.iota {dimensions = array<i32: 1>} : vector<16x64xi32>
    %2 = vector.broadcast %0 : vector<16x1xi32> to vector<16x64xi32>
    %3 = arith.cmpi eq, %2, %1 : vector<16x64xi32>
    %4 = arith.extui %3 : vector<16x64xi1> to vector<16x64xi32>
    %5 = arith.sitofp %4 : vector<16x64xi32> to vector<16x64xf32>
    %c0_1 = arith.constant 0 : index
    %c0_2 = arith.constant 0 : index
    %6 = vector.load %arg4[%c0_1, %c0_2] : memref<64x32xf32, #tpu.memory_space<vmem>>, vector<64x32xf32>
    %cst = arith.constant dense<0.000000e+00> : vector<16x32xf32>
    %7 = tpu.matmul %5, %6, %cst {dimension_numbers = #tpu.dot_dimension_numbers<[1], [0], [0], [1], [0, 0, 1, 1], [], []>} : vector<16x64xf32>, vector<64x32xf32>, vector<16x32xf32> -> vector<16x32xf32>
    %c0_3 = arith.constant 0 : index
    %c0_4 = arith.constant 0 : index
    %8 = vector.load %arg2[%c0_3, %c0_4] : memref<16x1xi32, #tpu.memory_space<vmem>>, vector<16x1xi32>
    %9 = arith.sitofp %8 : vector<16x1xi32> to vector<16x1xf32>
    %c0_5 = arith.constant 0 : index
    %c0_6 = arith.constant 0 : index
    %10 = vector.load %arg5[%c0_5, %c0_6] : memref<2x32xf32, #tpu.memory_space<vmem>>, vector<1x32xf32>
    %cst_7 = arith.constant 1.000000e+00 : f32
    %11 = vector.broadcast %cst_7 : f32 to vector<16x1xf32>
    %12 = arith.subf %11, %9 : vector<16x1xf32>
    %13 = vector.broadcast %10 : vector<1x32xf32> to vector<16x32xf32>
    %14 = vector.broadcast %12 : vector<16x1xf32> to vector<16x32xf32>
    %15 = arith.mulf %13, %14 : vector<16x32xf32>
    %c1 = arith.constant 1 : index
    %c0_8 = arith.constant 0 : index
    %16 = vector.load %arg5[%c1, %c0_8] : memref<2x32xf32, #tpu.memory_space<vmem>>, vector<1x32xf32>
    %17 = vector.broadcast %16 : vector<1x32xf32> to vector<16x32xf32>
    %18 = vector.broadcast %9 : vector<16x1xf32> to vector<16x32xf32>
    %19 = arith.mulf %17, %18 : vector<16x32xf32>
    %20 = arith.addf %15, %19 : vector<16x32xf32>
    %c0_9 = arith.constant 0 : index
    %c0_10 = arith.constant 0 : index
    %21 = vector.load %arg6[%c0_9, %c0_10] : memref<8x32xf32, #tpu.memory_space<vmem>>, vector<8x32xf32>
    %22 = tpu.concatenate %21, %21 in 0 : vector<8x32xf32>, vector<8x32xf32> -> vector<16x32xf32>
    %23 = arith.addf %7, %20 : vector<16x32xf32>
    %24 = arith.addf %23, %22 : vector<16x32xf32>
    %c0_11 = arith.constant 0 : index
    %c0_12 = arith.constant 0 : index
    %25 = vector.load %arg7[%c0_11, %c0_12] : memref<1x32xf32, #tpu.memory_space<vmem>>, vector<1x32xf32>
    %c0_13 = arith.constant 0 : index
    %c0_14 = arith.constant 0 : index
    %26 = vector.load %arg8[%c0_13, %c0_14] : memref<1x32xf32, #tpu.memory_space<vmem>>, vector<1x32xf32>
    %cst_15 = arith.constant dense<0.000000e+00> : vector<16xf32>
    %27 = vector.multi_reduction <add>, %24, %cst_15 [1] : vector<16x32xf32> to vector<16xf32>
    %28 = vector.shape_cast %27 : vector<16xf32> to vector<16x1xf32>
    %cst_16 = arith.constant 3.200000e+01 : f32
    %29 = vector.broadcast %cst_16 : f32 to vector<16x1xf32>
    %30 = arith.divf %28, %29 : vector<16x1xf32>
    %31 = vector.broadcast %30 : vector<16x1xf32> to vector<16x32xf32>
    %32 = arith.subf %24, %31 : vector<16x32xf32>
    %33 = arith.mulf %32, %32 : vector<16x32xf32>
    %cst_17 = arith.constant dense<0.000000e+00> : vector<16xf32>
    %34 = vector.multi_reduction <add>, %33, %cst_17 [1] : vector<16x32xf32> to vector<16xf32>
    %35 = vector.shape_cast %34 : vector<16xf32> to vector<16x1xf32>
    %cst_18 = arith.constant 3.200000e+01 : f32
    %36 = vector.broadcast %cst_18 : f32 to vector<16x1xf32>
    %37 = arith.divf %35, %36 : vector<16x1xf32>
    %38 = vector.broadcast %30 : vector<16x1xf32> to vector<16x32xf32>
    %39 = arith.subf %24, %38 : vector<16x32xf32>
    %cst_19 = arith.constant 9.99999996E-13 : f32
    %40 = vector.broadcast %cst_19 : f32 to vector<16x1xf32>
    %41 = arith.addf %37, %40 : vector<16x1xf32>
    %42 = math.rsqrt %41 : vector<16x1xf32>
    %43 = vector.broadcast %42 : vector<16x1xf32> to vector<16x32xf32>
    %44 = arith.mulf %39, %43 : vector<16x32xf32>
    %45 = vector.broadcast %25 : vector<1x32xf32> to vector<16x32xf32>
    %46 = arith.mulf %44, %45 : vector<16x32xf32>
    %47 = vector.broadcast %26 : vector<1x32xf32> to vector<16x32xf32>
    %48 = arith.addf %46, %47 : vector<16x32xf32>
    %c0_20 = arith.constant 0 : index
    %c0_21 = arith.constant 0 : index
    %49 = vector.load %arg3[%c0_20, %c0_21] : memref<2x8xf32, #tpu.memory_space<vmem>>, vector<2x8xf32>
    %cst_22 = arith.constant 1.000000e+00 : f32
    %50 = vector.broadcast %cst_22 : f32 to vector<2x8xf32>
    %51 = arith.subf %50, %49 : vector<2x8xf32>
    %cst_23 = arith.constant -1.000000e+04 : f32
    %52 = vector.broadcast %cst_23 : f32 to vector<2x8xf32>
    %53 = arith.mulf %51, %52 : vector<2x8xf32>
    %54 = vector.extract_strided_slice %53 {offsets = [0, 0], sizes = [1, 8], strides = [1, 1]} : vector<2x8xf32> to vector<1x8xf32>
    %55 = vector.extract_strided_slice %53 {offsets = [0, 0], sizes = [1, 8], strides = [1, 1]} : vector<2x8xf32> to vector<1x8xf32>
    %56 = vector.extract_strided_slice %53 {offsets = [1, 0], sizes = [1, 8], strides = [1, 1]} : vector<2x8xf32> to vector<1x8xf32>
    %57 = vector.extract_strided_slice %53 {offsets = [1, 0], sizes = [1, 8], strides = [1, 1]} : vector<2x8xf32> to vector<1x8xf32>
    %58 = vector.shape_cast %54 : vector<1x8xf32> to vector<1x1x8xf32>
    %59 = vector.shape_cast %55 : vector<1x8xf32> to vector<1x1x8xf32>
    %60 = vector.shape_cast %56 : vector<1x8xf32> to vector<1x1x8xf32>
    %61 = vector.shape_cast %57 : vector<1x8xf32> to vector<1x1x8xf32>
    %62 = tpu.concatenate %58, %59, %60, %61 in 0 : vector<1x1x8xf32>, vector<1x1x8xf32>, vector<1x1x8xf32>, vector<1x1x8xf32> -> vector<4x1x8xf32>
    %c0_i32 = arith.constant 0 : i32
    %63 = arith.truncf %48 : vector<16x32xf32> to vector<16x32xbf16>
    %64 = arith.index_cast %c0_i32 : i32 to index
    %c0_24 = arith.constant 0 : index
    %c0_25 = arith.constant 0 : index
    %65 = vector.load %arg9[%64, %c0_24, %c0_25] : memref<2x32x96xbf16, #tpu.memory_space<vmem>>, vector<1x32x96xbf16>
    %66 = vector.shape_cast %65 : vector<1x32x96xbf16> to vector<32x96xbf16>
    %cst_26 = arith.constant dense<0.000000e+00> : vector<16x96xf32>
    %67 = tpu.matmul %63, %66, %cst_26 {dimension_numbers = #tpu.dot_dimension_numbers<[1], [0], [0], [1], [0, 0, 1, 1], [], []>} : vector<16x32xbf16>, vector<32x96xbf16>, vector<16x96xf32> -> vector<16x96xf32>
    %68 = arith.index_cast %c0_i32 : i32 to index
    %c0_27 = arith.constant 0 : index
    %c0_28 = arith.constant 0 : index
    %69 = vector.load %arg10[%68, %c0_27, %c0_28] : memref<2x1x96xf32, #tpu.memory_space<vmem>>, vector<1x1x96xf32>
    %70 = vector.shape_cast %69 : vector<1x1x96xf32> to vector<1x96xf32>
    %71 = vector.broadcast %70 : vector<1x96xf32> to vector<16x96xf32>
    %72 = arith.addf %67, %71 : vector<16x96xf32>
    %73 = vector.extract_strided_slice %72 {offsets = [0, 0], sizes = [8, 16], strides = [1, 1]} : vector<16x96xf32> to vector<8x16xf32>
    %74 = vector.extract_strided_slice %72 {offsets = [0, 16], sizes = [8, 16], strides = [1, 1]} : vector<16x96xf32> to vector<8x16xf32>
    %75 = vector.extract_strided_slice %72 {offsets = [8, 0], sizes = [8, 16], strides = [1, 1]} : vector<16x96xf32> to vector<8x16xf32>
    %76 = vector.extract_strided_slice %72 {offsets = [8, 16], sizes = [8, 16], strides = [1, 1]} : vector<16x96xf32> to vector<8x16xf32>
    %77 = vector.shape_cast %73 : vector<8x16xf32> to vector<1x8x16xf32>
    %78 = vector.shape_cast %74 : vector<8x16xf32> to vector<1x8x16xf32>
    %79 = vector.shape_cast %75 : vector<8x16xf32> to vector<1x8x16xf32>
    %80 = vector.shape_cast %76 : vector<8x16xf32> to vector<1x8x16xf32>
    %81 = tpu.concatenate %77, %78, %79, %80 in 0 : vector<1x8x16xf32>, vector<1x8x16xf32>, vector<1x8x16xf32>, vector<1x8x16xf32> -> vector<4x8x16xf32>
    %82 = arith.truncf %81 : vector<4x8x16xf32> to vector<4x8x16xbf16>
    %83 = vector.extract_strided_slice %72 {offsets = [0, 32], sizes = [8, 16], strides = [1, 1]} : vector<16x96xf32> to vector<8x16xf32>
    %84 = vector.extract_strided_slice %72 {offsets = [0, 48], sizes = [8, 16], strides = [1, 1]} : vector<16x96xf32> to vector<8x16xf32>
    %85 = vector.extract_strided_slice %72 {offsets = [8, 32], sizes = [8, 16], strides = [1, 1]} : vector<16x96xf32> to vector<8x16xf32>
    %86 = vector.extract_strided_slice %72 {offsets = [8, 48], sizes = [8, 16], strides = [1, 1]} : vector<16x96xf32> to vector<8x16xf32>
    %87 = vector.shape_cast %83 : vector<8x16xf32> to vector<1x8x16xf32>
    %88 = vector.shape_cast %84 : vector<8x16xf32> to vector<1x8x16xf32>
    %89 = vector.shape_cast %85 : vector<8x16xf32> to vector<1x8x16xf32>
    %90 = vector.shape_cast %86 : vector<8x16xf32> to vector<1x8x16xf32>
    %91 = tpu.concatenate %87, %88, %89, %90 in 0 : vector<1x8x16xf32>, vector<1x8x16xf32>, vector<1x8x16xf32>, vector<1x8x16xf32> -> vector<4x8x16xf32>
    %92 = arith.truncf %91 : vector<4x8x16xf32> to vector<4x8x16xbf16>
    %93 = vector.extract_strided_slice %72 {offsets = [0, 64], sizes = [8, 16], strides = [1, 1]} : vector<16x96xf32> to vector<8x16xf32>
    %94 = vector.extract_strided_slice %72 {offsets = [0, 80], sizes = [8, 16], strides = [1, 1]} : vector<16x96xf32> to vector<8x16xf32>
    %95 = vector.extract_strided_slice %72 {offsets = [8, 64], sizes = [8, 16], strides = [1, 1]} : vector<16x96xf32> to vector<8x16xf32>
    %96 = vector.extract_strided_slice %72 {offsets = [8, 80], sizes = [8, 16], strides = [1, 1]} : vector<16x96xf32> to vector<8x16xf32>
    %97 = vector.shape_cast %93 : vector<8x16xf32> to vector<1x8x16xf32>
    %98 = vector.shape_cast %94 : vector<8x16xf32> to vector<1x8x16xf32>
    %99 = vector.shape_cast %95 : vector<8x16xf32> to vector<1x8x16xf32>
    %100 = vector.shape_cast %96 : vector<8x16xf32> to vector<1x8x16xf32>
    %101 = tpu.concatenate %97, %98, %99, %100 in 0 : vector<1x8x16xf32>, vector<1x8x16xf32>, vector<1x8x16xf32>, vector<1x8x16xf32> -> vector<4x8x16xf32>
    %102 = arith.truncf %101 : vector<4x8x16xf32> to vector<4x8x16xbf16>
    "tpu.trace_start"() <{level = 10 : i32, message = "gqd,gkd->gqk"}> : () -> ()
    %cst_29 = arith.constant dense<0.000000e+00> : vector<4x8x8xf32>
    %103 = tpu.matmul %82, %92, %cst_29 {dimension_numbers = #tpu.dot_dimension_numbers<[2], [2], [1], [1], [0, 0, 0, 1, 1, 1], [0], [0]>} : vector<4x8x16xbf16>, vector<4x8x16xbf16>, vector<4x8x8xf32> -> vector<4x8x8xf32>
    "tpu.trace_stop"() : () -> ()
    %104 = vector.broadcast %62 : vector<4x1x8xf32> to vector<4x8x8xf32>
    %105 = arith.addf %103, %104 : vector<4x8x8xf32>
    %cst_30 = arith.constant dense<0xFF800000> : vector<4x8xf32>
    %106 = vector.multi_reduction <maximumf>, %105, %cst_30 [2] : vector<4x8x8xf32> to vector<4x8xf32>
    %107 = vector.shape_cast %106 : vector<4x8xf32> to vector<4x8x1xf32>
    %108 = vector.broadcast %107 : vector<4x8x1xf32> to vector<4x8x8xf32>
    %109 = arith.subf %105, %108 : vector<4x8x8xf32>
    %110 = math.exp %109 : vector<4x8x8xf32>
    %cst_31 = arith.constant dense<0.000000e+00> : vector<4x8xf32>
    %111 = vector.multi_reduction <add>, %110, %cst_31 [2] : vector<4x8x8xf32> to vector<4x8xf32>
    %112 = vector.shape_cast %111 : vector<4x8xf32> to vector<4x8x1xf32>
    %113 = tpu.reciprocal %112 {approx = true} : vector<4x8x1xf32> -> vector<4x8x1xf32>
    %114 = vector.broadcast %113 : vector<4x8x1xf32> to vector<4x8x8xf32>
    %115 = arith.mulf %110, %114 : vector<4x8x8xf32>
    %116 = arith.truncf %115 : vector<4x8x8xf32> to vector<4x8x8xbf16>
    "tpu.trace_start"() <{level = 10 : i32, message = "gqk,gkd->gqd"}> : () -> ()
    %cst_32 = arith.constant dense<0.000000e+00> : vector<4x8x16xf32>
    %117 = tpu.matmul %116, %102, %cst_32 {dimension_numbers = #tpu.dot_dimension_numbers<[2], [1], [1], [2], [0, 0, 0, 1, 1, 2], [0], [0]>} : vector<4x8x8xbf16>, vector<4x8x16xbf16>, vector<4x8x16xf32> -> vector<4x8x16xf32>
    "tpu.trace_stop"() : () -> ()
    %118 = vector.extract_strided_slice %117 {offsets = [0, 0, 0], sizes = [1, 8, 16], strides = [1, 1, 1]} : vector<4x8x16xf32> to vector<1x8x16xf32>
    %119 = vector.shape_cast %118 : vector<1x8x16xf32> to vector<8x16xf32>
    %120 = vector.extract_strided_slice %117 {offsets = [1, 0, 0], sizes = [1, 8, 16], strides = [1, 1, 1]} : vector<4x8x16xf32> to vector<1x8x16xf32>
    %121 = vector.shape_cast %120 : vector<1x8x16xf32> to vector<8x16xf32>
    %122 = tpu.concatenate %119, %121 in 1 : vector<8x16xf32>, vector<8x16xf32> -> vector<8x32xf32>
    %123 = vector.extract_strided_slice %117 {offsets = [2, 0, 0], sizes = [1, 8, 16], strides = [1, 1, 1]} : vector<4x8x16xf32> to vector<1x8x16xf32>
    %124 = vector.shape_cast %123 : vector<1x8x16xf32> to vector<8x16xf32>
    %125 = vector.extract_strided_slice %117 {offsets = [3, 0, 0], sizes = [1, 8, 16], strides = [1, 1, 1]} : vector<4x8x16xf32> to vector<1x8x16xf32>
    %126 = vector.shape_cast %125 : vector<1x8x16xf32> to vector<8x16xf32>
    %127 = tpu.concatenate %124, %126 in 1 : vector<8x16xf32>, vector<8x16xf32> -> vector<8x32xf32>
    %128 = tpu.concatenate %122, %127 in 0 : vector<8x32xf32>, vector<8x32xf32> -> vector<16x32xf32>
    %129 = arith.truncf %128 : vector<16x32xf32> to vector<16x32xbf16>
    %130 = arith.index_cast %c0_i32 : i32 to index
    %c0_33 = arith.constant 0 : index
    %c0_34 = arith.constant 0 : index
    %131 = vector.load %arg11[%130, %c0_33, %c0_34] : memref<2x32x32xbf16, #tpu.memory_space<vmem>>, vector<1x32x32xbf16>
    %132 = vector.shape_cast %131 : vector<1x32x32xbf16> to vector<32x32xbf16>
    %cst_35 = arith.constant dense<0.000000e+00> : vector<16x32xf32>
    %133 = tpu.matmul %129, %132, %cst_35 {dimension_numbers = #tpu.dot_dimension_numbers<[1], [0], [0], [1], [0, 0, 1, 1], [], []>} : vector<16x32xbf16>, vector<32x32xbf16>, vector<16x32xf32> -> vector<16x32xf32>
    %134 = arith.index_cast %c0_i32 : i32 to index
    %c0_36 = arith.constant 0 : index
    %c0_37 = arith.constant 0 : index
    %135 = vector.load %arg12[%134, %c0_36, %c0_37] : memref<2x1x32xf32, #tpu.memory_space<vmem>>, vector<1x1x32xf32>
    %136 = vector.shape_cast %135 : vector<1x1x32xf32> to vector<1x32xf32>
    %137 = vector.broadcast %136 : vector<1x32xf32> to vector<16x32xf32>
    %138 = arith.addf %133, %137 : vector<16x32xf32>
    %139 = arith.addf %138, %48 : vector<16x32xf32>
    %140 = arith.index_cast %c0_i32 : i32 to index
    %c0_38 = arith.constant 0 : index
    %c0_39 = arith.constant 0 : index
    %141 = vector.load %arg13[%140, %c0_38, %c0_39] : memref<2x1x32xf32, #tpu.memory_space<vmem>>, vector<1x1x32xf32>
    %142 = vector.shape_cast %141 : vector<1x1x32xf32> to vector<1x32xf32>
    %143 = arith.index_cast %c0_i32 : i32 to index
    %c0_40 = arith.constant 0 : index
    %c0_41 = arith.constant 0 : index
    %144 = vector.load %arg14[%143, %c0_40, %c0_41] : memref<2x1x32xf32, #tpu.memory_space<vmem>>, vector<1x1x32xf32>
    %145 = vector.shape_cast %144 : vector<1x1x32xf32> to vector<1x32xf32>
    %cst_42 = arith.constant dense<0.000000e+00> : vector<16xf32>
    %146 = vector.multi_reduction <add>, %139, %cst_42 [1] : vector<16x32xf32> to vector<16xf32>
    %147 = vector.shape_cast %146 : vector<16xf32> to vector<16x1xf32>
    %cst_43 = arith.constant 3.200000e+01 : f32
    %148 = vector.broadcast %cst_43 : f32 to vector<16x1xf32>
    %149 = arith.divf %147, %148 : vector<16x1xf32>
    %150 = vector.broadcast %149 : vector<16x1xf32> to vector<16x32xf32>
    %151 = arith.subf %139, %150 : vector<16x32xf32>
    %152 = arith.mulf %151, %151 : vector<16x32xf32>
    %cst_44 = arith.constant dense<0.000000e+00> : vector<16xf32>
    %153 = vector.multi_reduction <add>, %152, %cst_44 [1] : vector<16x32xf32> to vector<16xf32>
    %154 = vector.shape_cast %153 : vector<16xf32> to vector<16x1xf32>
    %cst_45 = arith.constant 3.200000e+01 : f32
    %155 = vector.broadcast %cst_45 : f32 to vector<16x1xf32>
    %156 = arith.divf %154, %155 : vector<16x1xf32>
    %157 = vector.broadcast %149 : vector<16x1xf32> to vector<16x32xf32>
    %158 = arith.subf %139, %157 : vector<16x32xf32>
    %cst_46 = arith.constant 9.99999996E-13 : f32
    %159 = vector.broadcast %cst_46 : f32 to vector<16x1xf32>
    %160 = arith.addf %156, %159 : vector<16x1xf32>
    %161 = math.rsqrt %160 : vector<16x1xf32>
    %162 = vector.broadcast %161 : vector<16x1xf32> to vector<16x32xf32>
    %163 = arith.mulf %158, %162 : vector<16x32xf32>
    %164 = vector.broadcast %142 : vector<1x32xf32> to vector<16x32xf32>
    %165 = arith.mulf %163, %164 : vector<16x32xf32>
    %166 = vector.broadcast %145 : vector<1x32xf32> to vector<16x32xf32>
    %167 = arith.addf %165, %166 : vector<16x32xf32>
    %168 = arith.truncf %167 : vector<16x32xf32> to vector<16x32xbf16>
    %169 = arith.index_cast %c0_i32 : i32 to index
    %c0_47 = arith.constant 0 : index
    %c0_48 = arith.constant 0 : index
    %170 = vector.load %arg15[%169, %c0_47, %c0_48] : memref<2x32x64xbf16, #tpu.memory_space<vmem>>, vector<1x32x64xbf16>
    %171 = vector.shape_cast %170 : vector<1x32x64xbf16> to vector<32x64xbf16>
    %cst_49 = arith.constant dense<0.000000e+00> : vector<16x64xf32>
    %172 = tpu.matmul %168, %171, %cst_49 {dimension_numbers = #tpu.dot_dimension_numbers<[1], [0], [0], [1], [0, 0, 1, 1], [], []>} : vector<16x32xbf16>, vector<32x64xbf16>, vector<16x64xf32> -> vector<16x64xf32>
    %173 = arith.index_cast %c0_i32 : i32 to index
    %c0_50 = arith.constant 0 : index
    %c0_51 = arith.constant 0 : index
    %174 = vector.load %arg16[%173, %c0_50, %c0_51] : memref<2x1x64xf32, #tpu.memory_space<vmem>>, vector<1x1x64xf32>
    %175 = vector.shape_cast %174 : vector<1x1x64xf32> to vector<1x64xf32>
    %176 = vector.broadcast %175 : vector<1x64xf32> to vector<16x64xf32>
    %177 = arith.addf %172, %176 : vector<16x64xf32>
    %cst_52 = arith.constant 5.000000e-01 : f32
    %178 = vector.broadcast %cst_52 : f32 to vector<16x64xf32>
    %179 = arith.mulf %178, %177 : vector<16x64xf32>
    %cst_53 = arith.constant 4.471500e-02 : f32
    %180 = vector.broadcast %cst_53 : f32 to vector<16x64xf32>
    %181 = arith.mulf %180, %177 : vector<16x64xf32>
    %182 = arith.mulf %181, %177 : vector<16x64xf32>
    %183 = arith.mulf %182, %177 : vector<16x64xf32>
    %184 = arith.addf %177, %183 : vector<16x64xf32>
    %cst_54 = arith.constant 0.797884583 : f32
    %185 = vector.broadcast %cst_54 : f32 to vector<16x64xf32>
    %186 = arith.mulf %185, %184 : vector<16x64xf32>
    %187 = math.tanh %186 : vector<16x64xf32>
    %cst_55 = arith.constant 1.000000e+00 : f32
    %188 = vector.broadcast %cst_55 : f32 to vector<16x64xf32>
    %189 = arith.addf %188, %187 : vector<16x64xf32>
    %190 = arith.mulf %179, %189 : vector<16x64xf32>
    %191 = arith.truncf %190 : vector<16x64xf32> to vector<16x64xbf16>
    %192 = arith.index_cast %c0_i32 : i32 to index
    %c0_56 = arith.constant 0 : index
    %c0_57 = arith.constant 0 : index
    %193 = vector.load %arg17[%192, %c0_56, %c0_57] : memref<2x64x32xbf16, #tpu.memory_space<vmem>>, vector<1x64x32xbf16>
    %194 = vector.shape_cast %193 : vector<1x64x32xbf16> to vector<64x32xbf16>
    %cst_58 = arith.constant dense<0.000000e+00> : vector<16x32xf32>
    %195 = tpu.matmul %191, %194, %cst_58 {dimension_numbers = #tpu.dot_dimension_numbers<[1], [0], [0], [1], [0, 0, 1, 1], [], []>} : vector<16x64xbf16>, vector<64x32xbf16>, vector<16x32xf32> -> vector<16x32xf32>
    %196 = arith.index_cast %c0_i32 : i32 to index
    %c0_59 = arith.constant 0 : index
    %c0_60 = arith.constant 0 : index
    %197 = vector.load %arg18[%196, %c0_59, %c0_60] : memref<2x1x32xf32, #tpu.memory_space<vmem>>, vector<1x1x32xf32>
    %198 = vector.shape_cast %197 : vector<1x1x32xf32> to vector<1x32xf32>
    %199 = vector.broadcast %198 : vector<1x32xf32> to vector<16x32xf32>
    %200 = arith.addf %195, %199 : vector<16x32xf32>
    %201 = arith.addf %200, %167 : vector<16x32xf32>
    %202 = arith.index_cast %c0_i32 : i32 to index
    %c0_61 = arith.constant 0 : index
    %c0_62 = arith.constant 0 : index
    %203 = vector.load %arg19[%202, %c0_61, %c0_62] : memref<2x1x32xf32, #tpu.memory_space<vmem>>, vector<1x1x32xf32>
    %204 = vector.shape_cast %203 : vector<1x1x32xf32> to vector<1x32xf32>
    %205 = arith.index_cast %c0_i32 : i32 to index
    %c0_63 = arith.constant 0 : index
    %c0_64 = arith.constant 0 : index
    %206 = vector.load %arg20[%205, %c0_63, %c0_64] : memref<2x1x32xf32, #tpu.memory_space<vmem>>, vector<1x1x32xf32>
    %207 = vector.shape_cast %206 : vector<1x1x32xf32> to vector<1x32xf32>
    %cst_65 = arith.constant dense<0.000000e+00> : vector<16xf32>
    %208 = vector.multi_reduction <add>, %201, %cst_65 [1] : vector<16x32xf32> to vector<16xf32>
    %209 = vector.shape_cast %208 : vector<16xf32> to vector<16x1xf32>
    %cst_66 = arith.constant 3.200000e+01 : f32
    %210 = vector.broadcast %cst_66 : f32 to vector<16x1xf32>
    %211 = arith.divf %209, %210 : vector<16x1xf32>
    %212 = vector.broadcast %211 : vector<16x1xf32> to vector<16x32xf32>
    %213 = arith.subf %201, %212 : vector<16x32xf32>
    %214 = arith.mulf %213, %213 : vector<16x32xf32>
    %cst_67 = arith.constant dense<0.000000e+00> : vector<16xf32>
    %215 = vector.multi_reduction <add>, %214, %cst_67 [1] : vector<16x32xf32> to vector<16xf32>
    %216 = vector.shape_cast %215 : vector<16xf32> to vector<16x1xf32>
    %cst_68 = arith.constant 3.200000e+01 : f32
    %217 = vector.broadcast %cst_68 : f32 to vector<16x1xf32>
    %218 = arith.divf %216, %217 : vector<16x1xf32>
    %219 = vector.broadcast %211 : vector<16x1xf32> to vector<16x32xf32>
    %220 = arith.subf %201, %219 : vector<16x32xf32>
    %cst_69 = arith.constant 9.99999996E-13 : f32
    %221 = vector.broadcast %cst_69 : f32 to vector<16x1xf32>
    %222 = arith.addf %218, %221 : vector<16x1xf32>
    %223 = math.rsqrt %222 : vector<16x1xf32>
    %224 = vector.broadcast %223 : vector<16x1xf32> to vector<16x32xf32>
    %225 = arith.mulf %220, %224 : vector<16x32xf32>
    %226 = vector.broadcast %204 : vector<1x32xf32> to vector<16x32xf32>
    %227 = arith.mulf %225, %226 : vector<16x32xf32>
    %228 = vector.broadcast %207 : vector<1x32xf32> to vector<16x32xf32>
    %229 = arith.addf %227, %228 : vector<16x32xf32>
    %c1_i32 = arith.constant 1 : i32
    %230 = arith.truncf %229 : vector<16x32xf32> to vector<16x32xbf16>
    %231 = arith.index_cast %c1_i32 : i32 to index
    %c0_70 = arith.constant 0 : index
    %c0_71 = arith.constant 0 : index
    %232 = vector.load %arg9[%231, %c0_70, %c0_71] : memref<2x32x96xbf16, #tpu.memory_space<vmem>>, vector<1x32x96xbf16>
    %233 = vector.shape_cast %232 : vector<1x32x96xbf16> to vector<32x96xbf16>
    %cst_72 = arith.constant dense<0.000000e+00> : vector<16x96xf32>
    %234 = tpu.matmul %230, %233, %cst_72 {dimension_numbers = #tpu.dot_dimension_numbers<[1], [0], [0], [1], [0, 0, 1, 1], [], []>} : vector<16x32xbf16>, vector<32x96xbf16>, vector<16x96xf32> -> vector<16x96xf32>
    %235 = arith.index_cast %c1_i32 : i32 to index
    %c0_73 = arith.constant 0 : index
    %c0_74 = arith.constant 0 : index
    %236 = vector.load %arg10[%235, %c0_73, %c0_74] : memref<2x1x96xf32, #tpu.memory_space<vmem>>, vector<1x1x96xf32>
    %237 = vector.shape_cast %236 : vector<1x1x96xf32> to vector<1x96xf32>
    %238 = vector.broadcast %237 : vector<1x96xf32> to vector<16x96xf32>
    %239 = arith.addf %234, %238 : vector<16x96xf32>
    %240 = vector.extract_strided_slice %239 {offsets = [0, 0], sizes = [8, 16], strides = [1, 1]} : vector<16x96xf32> to vector<8x16xf32>
    %241 = vector.extract_strided_slice %239 {offsets = [0, 16], sizes = [8, 16], strides = [1, 1]} : vector<16x96xf32> to vector<8x16xf32>
    %242 = vector.extract_strided_slice %239 {offsets = [8, 0], sizes = [8, 16], strides = [1, 1]} : vector<16x96xf32> to vector<8x16xf32>
    %243 = vector.extract_strided_slice %239 {offsets = [8, 16], sizes = [8, 16], strides = [1, 1]} : vector<16x96xf32> to vector<8x16xf32>
    %244 = vector.shape_cast %240 : vector<8x16xf32> to vector<1x8x16xf32>
    %245 = vector.shape_cast %241 : vector<8x16xf32> to vector<1x8x16xf32>
    %246 = vector.shape_cast %242 : vector<8x16xf32> to vector<1x8x16xf32>
    %247 = vector.shape_cast %243 : vector<8x16xf32> to vector<1x8x16xf32>
    %248 = tpu.concatenate %244, %245, %246, %247 in 0 : vector<1x8x16xf32>, vector<1x8x16xf32>, vector<1x8x16xf32>, vector<1x8x16xf32> -> vector<4x8x16xf32>
    %249 = arith.truncf %248 : vector<4x8x16xf32> to vector<4x8x16xbf16>
    %250 = vector.extract_strided_slice %239 {offsets = [0, 32], sizes = [8, 16], strides = [1, 1]} : vector<16x96xf32> to vector<8x16xf32>
    %251 = vector.extract_strided_slice %239 {offsets = [0, 48], sizes = [8, 16], strides = [1, 1]} : vector<16x96xf32> to vector<8x16xf32>
    %252 = vector.extract_strided_slice %239 {offsets = [8, 32], sizes = [8, 16], strides = [1, 1]} : vector<16x96xf32> to vector<8x16xf32>
    %253 = vector.extract_strided_slice %239 {offsets = [8, 48], sizes = [8, 16], strides = [1, 1]} : vector<16x96xf32> to vector<8x16xf32>
    %254 = vector.shape_cast %250 : vector<8x16xf32> to vector<1x8x16xf32>
    %255 = vector.shape_cast %251 : vector<8x16xf32> to vector<1x8x16xf32>
    %256 = vector.shape_cast %252 : vector<8x16xf32> to vector<1x8x16xf32>
    %257 = vector.shape_cast %253 : vector<8x16xf32> to vector<1x8x16xf32>
    %258 = tpu.concatenate %254, %255, %256, %257 in 0 : vector<1x8x16xf32>, vector<1x8x16xf32>, vector<1x8x16xf32>, vector<1x8x16xf32> -> vector<4x8x16xf32>
    %259 = arith.truncf %258 : vector<4x8x16xf32> to vector<4x8x16xbf16>
    %260 = vector.extract_strided_slice %239 {offsets = [0, 64], sizes = [8, 16], strides = [1, 1]} : vector<16x96xf32> to vector<8x16xf32>
    %261 = vector.extract_strided_slice %239 {offsets = [0, 80], sizes = [8, 16], strides = [1, 1]} : vector<16x96xf32> to vector<8x16xf32>
    %262 = vector.extract_strided_slice %239 {offsets = [8, 64], sizes = [8, 16], strides = [1, 1]} : vector<16x96xf32> to vector<8x16xf32>
    %263 = vector.extract_strided_slice %239 {offsets = [8, 80], sizes = [8, 16], strides = [1, 1]} : vector<16x96xf32> to vector<8x16xf32>
    %264 = vector.shape_cast %260 : vector<8x16xf32> to vector<1x8x16xf32>
    %265 = vector.shape_cast %261 : vector<8x16xf32> to vector<1x8x16xf32>
    %266 = vector.shape_cast %262 : vector<8x16xf32> to vector<1x8x16xf32>
    %267 = vector.shape_cast %263 : vector<8x16xf32> to vector<1x8x16xf32>
    %268 = tpu.concatenate %264, %265, %266, %267 in 0 : vector<1x8x16xf32>, vector<1x8x16xf32>, vector<1x8x16xf32>, vector<1x8x16xf32> -> vector<4x8x16xf32>
    %269 = arith.truncf %268 : vector<4x8x16xf32> to vector<4x8x16xbf16>
    "tpu.trace_start"() <{level = 10 : i32, message = "gqd,gkd->gqk"}> : () -> ()
    %cst_75 = arith.constant dense<0.000000e+00> : vector<4x8x8xf32>
    %270 = tpu.matmul %249, %259, %cst_75 {dimension_numbers = #tpu.dot_dimension_numbers<[2], [2], [1], [1], [0, 0, 0, 1, 1, 1], [0], [0]>} : vector<4x8x16xbf16>, vector<4x8x16xbf16>, vector<4x8x8xf32> -> vector<4x8x8xf32>
    "tpu.trace_stop"() : () -> ()
    %271 = vector.broadcast %62 : vector<4x1x8xf32> to vector<4x8x8xf32>
    %272 = arith.addf %270, %271 : vector<4x8x8xf32>
    %cst_76 = arith.constant dense<0xFF800000> : vector<4x8xf32>
    %273 = vector.multi_reduction <maximumf>, %272, %cst_76 [2] : vector<4x8x8xf32> to vector<4x8xf32>
    %274 = vector.shape_cast %273 : vector<4x8xf32> to vector<4x8x1xf32>
    %275 = vector.broadcast %274 : vector<4x8x1xf32> to vector<4x8x8xf32>
    %276 = arith.subf %272, %275 : vector<4x8x8xf32>
    %277 = math.exp %276 : vector<4x8x8xf32>
    %cst_77 = arith.constant dense<0.000000e+00> : vector<4x8xf32>
    %278 = vector.multi_reduction <add>, %277, %cst_77 [2] : vector<4x8x8xf32> to vector<4x8xf32>
    %279 = vector.shape_cast %278 : vector<4x8xf32> to vector<4x8x1xf32>
    %280 = tpu.reciprocal %279 {approx = true} : vector<4x8x1xf32> -> vector<4x8x1xf32>
    %281 = vector.broadcast %280 : vector<4x8x1xf32> to vector<4x8x8xf32>
    %282 = arith.mulf %277, %281 : vector<4x8x8xf32>
    %283 = arith.truncf %282 : vector<4x8x8xf32> to vector<4x8x8xbf16>
    "tpu.trace_start"() <{level = 10 : i32, message = "gqk,gkd->gqd"}> : () -> ()
    %cst_78 = arith.constant dense<0.000000e+00> : vector<4x8x16xf32>
    %284 = tpu.matmul %283, %269, %cst_78 {dimension_numbers = #tpu.dot_dimension_numbers<[2], [1], [1], [2], [0, 0, 0, 1, 1, 2], [0], [0]>} : vector<4x8x8xbf16>, vector<4x8x16xbf16>, vector<4x8x16xf32> -> vector<4x8x16xf32>
    "tpu.trace_stop"() : () -> ()
    %285 = vector.extract_strided_slice %284 {offsets = [0, 0, 0], sizes = [1, 8, 16], strides = [1, 1, 1]} : vector<4x8x16xf32> to vector<1x8x16xf32>
    %286 = vector.shape_cast %285 : vector<1x8x16xf32> to vector<8x16xf32>
    %287 = vector.extract_strided_slice %284 {offsets = [1, 0, 0], sizes = [1, 8, 16], strides = [1, 1, 1]} : vector<4x8x16xf32> to vector<1x8x16xf32>
    %288 = vector.shape_cast %287 : vector<1x8x16xf32> to vector<8x16xf32>
    %289 = tpu.concatenate %286, %288 in 1 : vector<8x16xf32>, vector<8x16xf32> -> vector<8x32xf32>
    %290 = vector.extract_strided_slice %284 {offsets = [2, 0, 0], sizes = [1, 8, 16], strides = [1, 1, 1]} : vector<4x8x16xf32> to vector<1x8x16xf32>
    %291 = vector.shape_cast %290 : vector<1x8x16xf32> to vector<8x16xf32>
    %292 = vector.extract_strided_slice %284 {offsets = [3, 0, 0], sizes = [1, 8, 16], strides = [1, 1, 1]} : vector<4x8x16xf32> to vector<1x8x16xf32>
    %293 = vector.shape_cast %292 : vector<1x8x16xf32> to vector<8x16xf32>
    %294 = tpu.concatenate %291, %293 in 1 : vector<8x16xf32>, vector<8x16xf32> -> vector<8x32xf32>
    %295 = tpu.concatenate %289, %294 in 0 : vector<8x32xf32>, vector<8x32xf32> -> vector<16x32xf32>
    %296 = arith.truncf %295 : vector<16x32xf32> to vector<16x32xbf16>
    %297 = arith.index_cast %c1_i32 : i32 to index
    %c0_79 = arith.constant 0 : index
    %c0_80 = arith.constant 0 : index
    %298 = vector.load %arg11[%297, %c0_79, %c0_80] : memref<2x32x32xbf16, #tpu.memory_space<vmem>>, vector<1x32x32xbf16>
    %299 = vector.shape_cast %298 : vector<1x32x32xbf16> to vector<32x32xbf16>
    %cst_81 = arith.constant dense<0.000000e+00> : vector<16x32xf32>
    %300 = tpu.matmul %296, %299, %cst_81 {dimension_numbers = #tpu.dot_dimension_numbers<[1], [0], [0], [1], [0, 0, 1, 1], [], []>} : vector<16x32xbf16>, vector<32x32xbf16>, vector<16x32xf32> -> vector<16x32xf32>
    %301 = arith.index_cast %c1_i32 : i32 to index
    %c0_82 = arith.constant 0 : index
    %c0_83 = arith.constant 0 : index
    %302 = vector.load %arg12[%301, %c0_82, %c0_83] : memref<2x1x32xf32, #tpu.memory_space<vmem>>, vector<1x1x32xf32>
    %303 = vector.shape_cast %302 : vector<1x1x32xf32> to vector<1x32xf32>
    %304 = vector.broadcast %303 : vector<1x32xf32> to vector<16x32xf32>
    %305 = arith.addf %300, %304 : vector<16x32xf32>
    %306 = arith.addf %305, %229 : vector<16x32xf32>
    %307 = arith.index_cast %c1_i32 : i32 to index
    %c0_84 = arith.constant 0 : index
    %c0_85 = arith.constant 0 : index
    %308 = vector.load %arg13[%307, %c0_84, %c0_85] : memref<2x1x32xf32, #tpu.memory_space<vmem>>, vector<1x1x32xf32>
    %309 = vector.shape_cast %308 : vector<1x1x32xf32> to vector<1x32xf32>
    %310 = arith.index_cast %c1_i32 : i32 to index
    %c0_86 = arith.constant 0 : index
    %c0_87 = arith.constant 0 : index
    %311 = vector.load %arg14[%310, %c0_86, %c0_87] : memref<2x1x32xf32, #tpu.memory_space<vmem>>, vector<1x1x32xf32>
    %312 = vector.shape_cast %311 : vector<1x1x32xf32> to vector<1x32xf32>
    %cst_88 = arith.constant dense<0.000000e+00> : vector<16xf32>
    %313 = vector.multi_reduction <add>, %306, %cst_88 [1] : vector<16x32xf32> to vector<16xf32>
    %314 = vector.shape_cast %313 : vector<16xf32> to vector<16x1xf32>
    %cst_89 = arith.constant 3.200000e+01 : f32
    %315 = vector.broadcast %cst_89 : f32 to vector<16x1xf32>
    %316 = arith.divf %314, %315 : vector<16x1xf32>
    %317 = vector.broadcast %316 : vector<16x1xf32> to vector<16x32xf32>
    %318 = arith.subf %306, %317 : vector<16x32xf32>
    %319 = arith.mulf %318, %318 : vector<16x32xf32>
    %cst_90 = arith.constant dense<0.000000e+00> : vector<16xf32>
    %320 = vector.multi_reduction <add>, %319, %cst_90 [1] : vector<16x32xf32> to vector<16xf32>
    %321 = vector.shape_cast %320 : vector<16xf32> to vector<16x1xf32>
    %cst_91 = arith.constant 3.200000e+01 : f32
    %322 = vector.broadcast %cst_91 : f32 to vector<16x1xf32>
    %323 = arith.divf %321, %322 : vector<16x1xf32>
    %324 = vector.broadcast %316 : vector<16x1xf32> to vector<16x32xf32>
    %325 = arith.subf %306, %324 : vector<16x32xf32>
    %cst_92 = arith.constant 9.99999996E-13 : f32
    %326 = vector.broadcast %cst_92 : f32 to vector<16x1xf32>
    %327 = arith.addf %323, %326 : vector<16x1xf32>
    %328 = math.rsqrt %327 : vector<16x1xf32>
    %329 = vector.broadcast %328 : vector<16x1xf32> to vector<16x32xf32>
    %330 = arith.mulf %325, %329 : vector<16x32xf32>
    %331 = vector.broadcast %309 : vector<1x32xf32> to vector<16x32xf32>
    %332 = arith.mulf %330, %331 : vector<16x32xf32>
    %333 = vector.broadcast %312 : vector<1x32xf32> to vector<16x32xf32>
    %334 = arith.addf %332, %333 : vector<16x32xf32>
    %335 = arith.truncf %334 : vector<16x32xf32> to vector<16x32xbf16>
    %336 = arith.index_cast %c1_i32 : i32 to index
    %c0_93 = arith.constant 0 : index
    %c0_94 = arith.constant 0 : index
    %337 = vector.load %arg15[%336, %c0_93, %c0_94] : memref<2x32x64xbf16, #tpu.memory_space<vmem>>, vector<1x32x64xbf16>
    %338 = vector.shape_cast %337 : vector<1x32x64xbf16> to vector<32x64xbf16>
    %cst_95 = arith.constant dense<0.000000e+00> : vector<16x64xf32>
    %339 = tpu.matmul %335, %338, %cst_95 {dimension_numbers = #tpu.dot_dimension_numbers<[1], [0], [0], [1], [0, 0, 1, 1], [], []>} : vector<16x32xbf16>, vector<32x64xbf16>, vector<16x64xf32> -> vector<16x64xf32>
    %340 = arith.index_cast %c1_i32 : i32 to index
    %c0_96 = arith.constant 0 : index
    %c0_97 = arith.constant 0 : index
    %341 = vector.load %arg16[%340, %c0_96, %c0_97] : memref<2x1x64xf32, #tpu.memory_space<vmem>>, vector<1x1x64xf32>
    %342 = vector.shape_cast %341 : vector<1x1x64xf32> to vector<1x64xf32>
    %343 = vector.broadcast %342 : vector<1x64xf32> to vector<16x64xf32>
    %344 = arith.addf %339, %343 : vector<16x64xf32>
    %cst_98 = arith.constant 5.000000e-01 : f32
    %345 = vector.broadcast %cst_98 : f32 to vector<16x64xf32>
    %346 = arith.mulf %345, %344 : vector<16x64xf32>
    %cst_99 = arith.constant 4.471500e-02 : f32
    %347 = vector.broadcast %cst_99 : f32 to vector<16x64xf32>
    %348 = arith.mulf %347, %344 : vector<16x64xf32>
    %349 = arith.mulf %348, %344 : vector<16x64xf32>
    %350 = arith.mulf %349, %344 : vector<16x64xf32>
    %351 = arith.addf %344, %350 : vector<16x64xf32>
    %cst_100 = arith.constant 0.797884583 : f32
    %352 = vector.broadcast %cst_100 : f32 to vector<16x64xf32>
    %353 = arith.mulf %352, %351 : vector<16x64xf32>
    %354 = math.tanh %353 : vector<16x64xf32>
    %cst_101 = arith.constant 1.000000e+00 : f32
    %355 = vector.broadcast %cst_101 : f32 to vector<16x64xf32>
    %356 = arith.addf %355, %354 : vector<16x64xf32>
    %357 = arith.mulf %346, %356 : vector<16x64xf32>
    %358 = arith.truncf %357 : vector<16x64xf32> to vector<16x64xbf16>
    %359 = arith.index_cast %c1_i32 : i32 to index
    %c0_102 = arith.constant 0 : index
    %c0_103 = arith.constant 0 : index
    %360 = vector.load %arg17[%359, %c0_102, %c0_103] : memref<2x64x32xbf16, #tpu.memory_space<vmem>>, vector<1x64x32xbf16>
    %361 = vector.shape_cast %360 : vector<1x64x32xbf16> to vector<64x32xbf16>
    %cst_104 = arith.constant dense<0.000000e+00> : vector<16x32xf32>
    %362 = tpu.matmul %358, %361, %cst_104 {dimension_numbers = #tpu.dot_dimension_numbers<[1], [0], [0], [1], [0, 0, 1, 1], [], []>} : vector<16x64xbf16>, vector<64x32xbf16>, vector<16x32xf32> -> vector<16x32xf32>
    %363 = arith.index_cast %c1_i32 : i32 to index
    %c0_105 = arith.constant 0 : index
    %c0_106 = arith.constant 0 : index
    %364 = vector.load %arg18[%363, %c0_105, %c0_106] : memref<2x1x32xf32, #tpu.memory_space<vmem>>, vector<1x1x32xf32>
    %365 = vector.shape_cast %364 : vector<1x1x32xf32> to vector<1x32xf32>
    %366 = vector.broadcast %365 : vector<1x32xf32> to vector<16x32xf32>
    %367 = arith.addf %362, %366 : vector<16x32xf32>
    %368 = arith.addf %367, %334 : vector<16x32xf32>
    %369 = arith.index_cast %c1_i32 : i32 to index
    %c0_107 = arith.constant 0 : index
    %c0_108 = arith.constant 0 : index
    %370 = vector.load %arg19[%369, %c0_107, %c0_108] : memref<2x1x32xf32, #tpu.memory_space<vmem>>, vector<1x1x32xf32>
    %371 = vector.shape_cast %370 : vector<1x1x32xf32> to vector<1x32xf32>
    %372 = arith.index_cast %c1_i32 : i32 to index
    %c0_109 = arith.constant 0 : index
    %c0_110 = arith.constant 0 : index
    %373 = vector.load %arg20[%372, %c0_109, %c0_110] : memref<2x1x32xf32, #tpu.memory_space<vmem>>, vector<1x1x32xf32>
    %374 = vector.shape_cast %373 : vector<1x1x32xf32> to vector<1x32xf32>
    %cst_111 = arith.constant dense<0.000000e+00> : vector<16xf32>
    %375 = vector.multi_reduction <add>, %368, %cst_111 [1] : vector<16x32xf32> to vector<16xf32>
    %376 = vector.shape_cast %375 : vector<16xf32> to vector<16x1xf32>
    %cst_112 = arith.constant 3.200000e+01 : f32
    %377 = vector.broadcast %cst_112 : f32 to vector<16x1xf32>
    %378 = arith.divf %376, %377 : vector<16x1xf32>
    %379 = vector.broadcast %378 : vector<16x1xf32> to vector<16x32xf32>
    %380 = arith.subf %368, %379 : vector<16x32xf32>
    %381 = arith.mulf %380, %380 : vector<16x32xf32>
    %cst_113 = arith.constant dense<0.000000e+00> : vector<16xf32>
    %382 = vector.multi_reduction <add>, %381, %cst_113 [1] : vector<16x32xf32> to vector<16xf32>
    %383 = vector.shape_cast %382 : vector<16xf32> to vector<16x1xf32>
    %cst_114 = arith.constant 3.200000e+01 : f32
    %384 = vector.broadcast %cst_114 : f32 to vector<16x1xf32>
    %385 = arith.divf %383, %384 : vector<16x1xf32>
    %386 = vector.broadcast %378 : vector<16x1xf32> to vector<16x32xf32>
    %387 = arith.subf %368, %386 : vector<16x32xf32>
    %cst_115 = arith.constant 9.99999996E-13 : f32
    %388 = vector.broadcast %cst_115 : f32 to vector<16x1xf32>
    %389 = arith.addf %385, %388 : vector<16x1xf32>
    %390 = math.rsqrt %389 : vector<16x1xf32>
    %391 = vector.broadcast %390 : vector<16x1xf32> to vector<16x32xf32>
    %392 = arith.mulf %387, %391 : vector<16x32xf32>
    %393 = vector.broadcast %371 : vector<1x32xf32> to vector<16x32xf32>
    %394 = arith.mulf %392, %393 : vector<16x32xf32>
    %395 = vector.broadcast %374 : vector<1x32xf32> to vector<16x32xf32>
    %396 = arith.addf %394, %395 : vector<16x32xf32>
    %c2_i32 = arith.constant 2 : i32
    %c0_116 = arith.constant 0 : index
    %c0_117 = arith.constant 0 : index
    %397 = vector.load %arg21[%c0_116, %c0_117] : memref<16x32xf32, #tpu.memory_space<vmem>>, vector<16x32xf32>
    tpu.vector_store %arg21[%c0_116, %c0_117], %396 {strides = array<i32>} : memref<16x32xf32, #tpu.memory_space<vmem>>, vector<16x32xf32>,
    return
  }
  func.func @transform_0(%arg0: i32) -> (i32, i32) {
    %c0_i32 = arith.constant 0 : i32
    %c0_i32_0 = arith.constant 0 : i32
    %c0_i32_1 = arith.constant 0 : i32
    return %c0_i32, %c0_i32_0 : i32, i32
  }
  func.func @transform_1(%arg0: i32) -> (i32, i32) {
    %c0_i32 = arith.constant 0 : i32
    %c0_i32_0 = arith.constant 0 : i32
    %c0_i32_1 = arith.constant 0 : i32
    return %c0_i32, %c0_i32_0 : i32, i32
  }
  func.func @transform_2(%arg0: i32) -> (i32, i32) {
    %c0_i32 = arith.constant 0 : i32
    %c0_i32_0 = arith.constant 0 : i32
    %c0_i32_1 = arith.constant 0 : i32
    return %c0_i32, %c0_i32_0 : i32, i32
  }
  func.func @transform_3(%arg0: i32) -> (i32, i32) {
    %c0_i32 = arith.constant 0 : i32
    %c0_i32_0 = arith.constant 0 : i32
    %c0_i32_1 = arith.constant 0 : i32
    return %c0_i32, %c0_i32_0 : i32, i32
  }
  func.func @transform_4(%arg0: i32) -> (i32, i32) {
    %c0_i32 = arith.constant 0 : i32
    %c0_i32_0 = arith.constant 0 : i32
    %c0_i32_1 = arith.constant 0 : i32
    return %c0_i32, %c0_i32_0 : i32, i32
  }
  func.func @transform_5(%arg0: i32) -> (i32, i32) {
    %c0_i32 = arith.constant 0 : i32
    %c0_i32_0 = arith.constant 0 : i32
    %c0_i32_1 = arith.constant 0 : i32
    return %c0_i32, %c0_i32_0 : i32, i32
  }
  func.func @transform_6(%arg0: i32) -> (i32, i32) {
    %c0_i32 = arith.constant 0 : i32
    %c0_i32_0 = arith.constant 0 : i32
    %c0_i32_1 = arith.constant 0 : i32
    return %c0_i32, %c0_i32_0 : i32, i32
  }
  func.func @transform_7(%arg0: i32) -> (i32, i32) {
    %c0_i32 = arith.constant 0 : i32
    %c0_i32_0 = arith.constant 0 : i32
    %c0_i32_1 = arith.constant 0 : i32
    return %c0_i32, %c0_i32_0 : i32, i32
  }
  func.func @transform_8(%arg0: i32) -> (i32, i32, i32) {
    %c0_i32 = arith.constant 0 : i32
    %c0_i32_0 = arith.constant 0 : i32
    %c0_i32_1 = arith.constant 0 : i32
    %c0_i32_2 = arith.constant 0 : i32
    return %c0_i32, %c0_i32_0, %c0_i32_1 : i32, i32, i32
  }
  func.func @transform_9(%arg0: i32) -> (i32, i32, i32) {
    %c0_i32 = arith.constant 0 : i32
    %c0_i32_0 = arith.constant 0 : i32
    %c0_i32_1 = arith.constant 0 : i32
    %c0_i32_2 = arith.constant 0 : i32
    return %c0_i32, %c0_i32_0, %c0_i32_1 : i32, i32, i32
  }
  func.func @transform_10(%arg0: i32) -> (i32, i32, i32) {
    %c0_i32 = arith.constant 0 : i32
    %c0_i32_0 = arith.constant 0 : i32
    %c0_i32_1 = arith.constant 0 : i32
    %c0_i32_2 = arith.constant 0 : i32
    return %c0_i32, %c0_i32_0, %c0_i32_1 : i32, i32, i32
  }
  func.func @transform_11(%arg0: i32) -> (i32, i32, i32) {
    %c0_i32 = arith.constant 0 : i32
    %c0_i32_0 = arith.constant 0 : i32
    %c0_i32_1 = arith.constant 0 : i32
    %c0_i32_2 = arith.constant 0 : i32
    return %c0_i32, %c0_i32_0, %c0_i32_1 : i32, i32, i32
  }
  func.func @transform_12(%arg0: i32) -> (i32, i32, i32) {
    %c0_i32 = arith.constant 0 : i32
    %c0_i32_0 = arith.constant 0 : i32
    %c0_i32_1 = arith.constant 0 : i32
    %c0_i32_2 = arith.constant 0 : i32
    return %c0_i32, %c0_i32_0, %c0_i32_1 : i32, i32, i32
  }
  func.func @transform_13(%arg0: i32) -> (i32, i32, i32) {
    %c0_i32 = arith.constant 0 : i32
    %c0_i32_0 = arith.constant 0 : i32
    %c0_i32_1 = arith.constant 0 : i32
    %c0_i32_2 = arith.constant 0 : i32
    return %c0_i32, %c0_i32_0, %c0_i32_1 : i32, i32, i32
  }
  func.func @transform_14(%arg0: i32) -> (i32, i32, i32) {
    %c0_i32 = arith.constant 0 : i32
    %c0_i32_0 = arith.constant 0 : i32
    %c0_i32_1 = arith.constant 0 : i32
    %c0_i32_2 = arith.constant 0 : i32
    return %c0_i32, %c0_i32_0, %c0_i32_1 : i32, i32, i32
  }
  func.func @transform_15(%arg0: i32) -> (i32, i32, i32) {
    %c0_i32 = arith.constant 0 : i32
    %c0_i32_0 = arith.constant 0 : i32
    %c0_i32_1 = arith.constant 0 : i32
    %c0_i32_2 = arith.constant 0 : i32
    return %c0_i32, %c0_i32_0, %c0_i32_1 : i32, i32, i32
  }
  func.func @transform_16(%arg0: i32) -> (i32, i32, i32) {
    %c0_i32 = arith.constant 0 : i32
    %c0_i32_0 = arith.constant 0 : i32
    %c0_i32_1 = arith.constant 0 : i32
    %c0_i32_2 = arith.constant 0 : i32
    return %c0_i32, %c0_i32_0, %c0_i32_1 : i32, i32, i32
  }
  func.func @transform_17(%arg0: i32) -> (i32, i32, i32) {
    %c0_i32 = arith.constant 0 : i32
    %c0_i32_0 = arith.constant 0 : i32
    %c0_i32_1 = arith.constant 0 : i32
    %c0_i32_2 = arith.constant 0 : i32
    return %c0_i32, %c0_i32_0, %c0_i32_1 : i32, i32, i32
  }
  func.func @transform_18(%arg0: i32) -> (i32, i32, i32) {
    %c0_i32 = arith.constant 0 : i32
    %c0_i32_0 = arith.constant 0 : i32
    %c0_i32_1 = arith.constant 0 : i32
    %c0_i32_2 = arith.constant 0 : i32
    return %c0_i32, %c0_i32_0, %c0_i32_1 : i32, i32, i32
  }
  func.func @transform_19(%arg0: i32) -> (i32, i32, i32) {
    %c0_i32 = arith.constant 0 : i32
    %c0_i32_0 = arith.constant 0 : i32
    %c0_i32_1 = arith.constant 0 : i32
    %c0_i32_2 = arith.constant 0 : i32
    return %c0_i32, %c0_i32_0, %c0_i32_1 : i32, i32, i32
  }
  func.func @transform_20(%arg0: i32) -> (i32, i32) {
    %c0_i32 = arith.constant 0 : i32
    %c0_i32_0 = arith.constant 0 : i32
    %c0_i32_1 = arith.constant 0 : i32
    return %c0_i32, %c0_i32_0 : i32, i32
  }
}

</mosaic_0001>

<bundles_post_ra>
// kernel: bert_forward.1
= control target key start
LH: loop header
LB: loop body
LE: loop exit
PB: predicated region body
PF: predicated region fallthrough
CT: control target
= control target key end

     0   :  { %s3069_s0 = inlined_call_operand.vmem [shape: s32[16,1], index: 0, kind: input, shape index: {}]   ;;  %s3070_s1 = inlined_call_operand.vmem [shape: s32[16,1], index: 1, kind: input, shape index: {}]   ;;  %s3071_s2 = inlined_call_operand.vmem [shape: f32[2,8], index: 2, kind: input, shape index: {}]   ;;  %s3072_s3 = inlined_call_operand.vmem [shape: f32[64,32], index: 3, kind: input, shape index: {}]   ;;  %s3073_s4 = inlined_call_operand.vmem [shape: f32[2,32], index: 4, kind: input, shape index: {}]   ;;  %s3074_s5 = inlined_call_operand.vmem [shape: f32[8,32], index: 5, kind: input, shape index: {}]   ;;  %s3075_s6 = inlined_call_operand.vmem [shape: f32[1,32], index: 6, kind: input, shape index: {}]   ;;  %s3076_s7 = inlined_call_operand.vmem [shape: f32[1,32], index: 7, kind: input, shape index: {}]   ;;  %s3077_s8 = inlined_call_operand.vmem [shape: bf16[2,32,96], index: 8, kind: input, shape index: {}]   ;;  %s3078_s9 = inlined_call_operand.vmem [shape: f32[2,1,96], index: 9, kind: input, shape index: {}]   ;;  %s3079_s10 = inlined_call_operand.vmem [shape: bf16[2,32,32], index: 10, kind: input, shape index: {}]   ;;  %s3080_s11 = inlined_call_operand.vmem [shape: f32[2,1,32], index: 11, kind: input, shape index: {}]   ;;  %s3081_s12 = inlined_call_operand.vmem [shape: f32[2,1,32], index: 12, kind: input, shape index: {}]   ;;  %s3082_s13 = inlined_call_operand.vmem [shape: f32[2,1,32], index: 13, kind: input, shape index: {}]   ;;  %s3083_s14 = inlined_call_operand.vmem [shape: bf16[2,32,64], index: 14, kind: input, shape index: {}]   ;;  %s3084_s15 = inlined_call_operand.vmem [shape: f32[2,1,64], index: 15, kind: input, shape index: {}]   ;;  %s3085_s16 = inlined_call_operand.vmem [shape: bf16[2,64,32], index: 16, kind: input, shape index: {}]   ;;  %s3086_s17 = inlined_call_operand.vmem [shape: f32[2,1,32], index: 17, kind: input, shape index: {}]   ;;  %s3087_s18 = inlined_call_operand.vmem [shape: f32[2,1,32], index: 18, kind: input, shape index: {}]   ;;  %s3088_s19 = inlined_call_operand.vmem [shape: f32[2,1,32], index: 19, kind: input, shape index: {}]   ;;  %s3089_s20 = inlined_call_operand.hbm [shape: f32[16,32], index: 20, kind: output, shape index: {}]  }
   0x1   :  { %3095 = sst [smem:[#allocation5_spill]] %s3069_s0 }
   0x2   :  { %3096 = sst [smem:[#allocation6_spill]] %s3070_s1 }
   0x3   :  { %3097 = sst [smem:[#allocation7_spill]] %s3071_s2 }
   0x4   :  { %3098 = sst [smem:[#allocation8_spill]] %s3072_s3 }
   0x5   :  { %3099 = sst [smem:[#allocation9_spill]] %s3073_s4 }
   0x6   :  { %3100 = sst [smem:[#allocation10_spill]] %s3084_s15 }
   0x7   :  { %s3101_s23 = sld [smem:[#allocation5_spill]]  ;;  %s3102_s15 = sld [smem:[#allocation6_spill]]  ;;  %v2518_v2 = vmov 0   ;;  %v2519_v14 = vmov 0.0  }
   0x8   :  { %2402 = vset.pattern.permute.xlu0 %v2518_v2  ;;  %2403 = vset.pattern.permute.xlu1 %v2518_v2  ;;  %s3103_s26 = sld [smem:[#allocation8_spill]] }
   0x9   :  { %2208 = vmatprep.subr.bf16.mxu1 %v2519_v14 }
   0xd   :  { %v67_v0 = vld [vmem:[%s3101_s23] sm:$0xff]  ;;  %v68_v7 = vld [vmem:[%s3101_s23 + $0x8] sm:$0xff] }
   0xe   :  { %v91_v1 = vld [vmem:[%s3102_s15] sm:$0xff]  ;;  %v84_v5 = vld [vmem:[%s3103_s26 + $0x8] sm:$0xff]  ;;  %v85_v6 = vld [vmem:[%s3103_s26 + $0x10] sm:$0xff]  ;;  %72 = vperm.xlu0 %2402, %v67_v0  }
   0xf   :  { %v93_v3 = vcvt.s32.f32 %v91_v1  ;;  %v83_v4 = vld [vmem:[%s3103_s26] sm:$0xff]  ;;  %v86_v9 = vld [vmem:[%s3103_s26 + $0x18] sm:$0xff]  ;;  %v88_v13 = vld [vmem:[%s3103_s26 + $0x28] sm:$0xff] }
  0x10   :  { %v2376_v8 = vpack.c.bf16 %v84_v5, %v83_v4  ;;  %v2380_v11 = vpack.c.bf16 %v86_v9, %v85_v6  ;;  %v87_v12 = vld [vmem:[%s3103_s26 + $0x20] sm:$0xff]  ;;  %v89_v15 = vld [vmem:[%s3103_s26 + $0x30] sm:$0xff]  ;;  %v90_v16 = vld [vmem:[%s3103_s26 + $0x38] sm:$0xff] }
  0x11   :  { %v96_v10 = vsub.f32 1.0, %v93_v3  ;;  %v2384_v17 = vpack.c.bf16 %v88_v13, %v87_v12  ;;  %v2388_v18 = vpack.c.bf16 %v90_v16, %v89_v15  ;;  %v92_v19 = vld [vmem:[%s3102_s15 + $0x8] sm:$0xff] }
  0x12   :  { %2377 = vmatprep.subr.bf16.mxu0 %v2376_v8  ;;  %75 = vperm.xlu0 %2402, %v68_v7   ;;  %v94_v20 = vcvt.s32.f32 %v92_v19 }
  0x13   :  { %104 = vperm.xlu1 %2403, %v96_v10   ;;  %2379 = vmatpush3.bf16.msra.mxu0 %v2376_v8 }
  0x14   :  { %2381 = vmatprep.subr.bf16.mxu0 %v2380_v11  ;;  %v97_v21 = vsub.f32 1.0, %v94_v20 }
  0x16   :  { %121 = vperm.xlu0 %2402, %v93_v3  }
  0x17   :  { %2383 = vmatpush3.bf16.msra.mxu0 %v2380_v11  ;;  %109 = vperm.xlu1 %2403, %v97_v21  }
  0x18   :  { %2385 = vmatprep.subr.bf16.mxu0 %v2384_v17 }
  0x1b   :  { %2387 = vmatpush3.bf16.msra.mxu0 %v2384_v17 }
  0x1c   :  { %2389 = vmatprep.subr.bf16.mxu0 %v2388_v18 }
  0x1f   :  { %2391 = vmatpush3.bf16.msra.mxu0 %v2388_v18 }
  0x20   :  { %2234 = vmatprep.subr.bf16.mxu0 %v2519_v14 }
  0x21   :  { %25 = vsyncpa [#allocation3], 0  ;;  %126 = vperm.xlu1 %2403, %v94_v20   ;;  %v69_v22 = vlaneseq  ;;  %vm134_vm0 = vcmask 523264   ;;  %s3104_s30 = sld [smem:[#allocation9_spill]]  ;;  %v133_v41 = vld [vmem:[%s3074_s5] sm:$0xff]  ;;  %vm220_vm3 = vcmask 261120  }
  0x22   :  { %v2414_v59 = vld [vmem:[%s3077_s8] sm:$0xff]   ;;  %v2415_v60 = vld [vmem:[%s3077_s8 + $0x8] sm:$0xff]   ;;  %vm2520_vm4 = vmmov 0   ;;  %s2522_s29 = smov 96   ;;  %vm361_vm5 = vcmask 130048   ;;  %vm555_vm6 = vcmask 64512  }
  0x23   :  { %v70_v23 = vand.u32 127, %v69_v22  ;;  %2209 = vmatpush3.bf16.msra.mxu1 %v2414_v59  ;;  %2212 = vmatprep.mubr.msk.bf16.mxu1 %vm2520_vm4, %v2519_v14  ;;  %v2029_v5 = vld [vmem:[%s3075_s6] ss:$0 sm:$0xff]  ;;  %s2523_s0 = smov 64   ;;  %vm609_vm7 = vcmask 1043456   ;;  %s2524_s24 = smov 16  }
  0x24   :  { %2210 = vmatprep.subr.bf16.mxu1 %v2519_v14  ;;  %v2030_v9 = vld [vmem:[%s3076_s7] ss:$0 sm:$0xff]  ;;  %s2521_s7 = smov 112   ;;  %s3106_s28 = sld [smem:[#allocation10_spill]] }
  0x25   :  { %v2031_v15 = vld [vmem:[%s3078_s9] ss:$0 sm:$0xff] }
  0x27   :  { %v2025_v31 = vld [vmem:[%s3104_s30] ss:$0 sm:$0xff]  ;;  %v2026_v32 = vld [vmem:[%s3104_s30 + $0x1] ss:$0 sm:$0xff]  ;;  %2211 = vmatpush3.bf16.msra.mxu1 %v2415_v60  ;;  %s3105_s30 = sld [smem:[#allocation7_spill]] }
  0x28   :  { %2216 = vmatprep.subr.bf16.mxu1 %v2519_v14 }
  0x8d   :  { %v73_v24 = vpop.permute.xlu0 %72 }
  0x8e   :  { %vm77_vm1 = vcmp.eq.s32.totalorder %v73_v24, %v70_v23 }
  0x8f   :  { %v2023_v25 = vsel %vm77_vm1, 1.0, %v2519_v14 }
  0x90   :  { %2205 = vmatprep.mubr.msk.f32.mxu0 %vm134_vm0, %v2023_v25 }
  0x91   :  { %v76_v26 = vpop.permute.xlu0 %75 }
  0x92   :  { %vm78_vm2 = vcmp.eq.s32.totalorder %v76_v26, %v70_v23  ;;  %v105_v28 = vpop.permute.xlu1 %104 }
  0x93   :  { %v2024_v27 = vsel %vm78_vm2, 1.0, %v2519_v14  ;;  %v112_v36 = vmul.f32 %v2025_v31, %v105_v28 }
  0x94   :  { %2206 = vmatmul.mubr.msk.f32.vlgmr.msra.gmra.mrb[0].mxu0 %vm134_vm0, %v2024_v27 }
  0x95   :  { %v122_v33 = vpop.permute.xlu0 %121  ;;  %2236 = vmatprep.mubr.msk.bf16.mxu0 %vm2520_vm4, %v2519_v14 }
  0x96   :  { %v110_v29 = vpop.permute.xlu1 %109  ;;  %v129_v37 = vmul.f32 %v2026_v32, %v122_v33 }
  0x97   :  { %v113_v34 = vmul.f32 %v2025_v31, %v110_v29 }
  0x98   :  { %v131_v40 = vadd.f32 %v129_v37, %v112_v36 }
  0xa0   :  { %v127_v30 = vpop.permute.xlu1 %126 }
  0xa1   :  { %v130_v35 = vmul.f32 %v2026_v32, %v127_v30 }
  0xa3   :  { %v132_v38 = vadd.f32 %v130_v35, %v113_v34 }
 0x167   :  { %v2207_v39 = vpop.f32.mrb[0].mxu0 }
 0x168   :  { %v213_v42 = vadd.f32 %v2207_v39, %v132_v38  ;;  %v207_v43 = vpop.f32.mrb[1].mxu0 }
 0x169   :  { %v208_v44 = vadd.f32 %v207_v43, %v131_v40  ;;  %v351_v43 = vshrl.u32 %v69_v22, 7 }
 0x16a   :  { %v217_v45 = vadd.f32 %v213_v42, %v133_v41 }
 0x16b   :  { %v216_v46 = vadd.f32 %v208_v44, %v133_v41  ;;  %v264_v41 = vld [vmem:[%s3105_s30] sm:$0x3] }
 0x16c   :  { %v224_v47 = vsel %vm220_vm3, %v217_v45, 0.0  ;;  %v265_v42 = vsub.f32 1.0, %v264_v41 }
 0x16d   :  { %225 = vadd.xlane.f32.xlu1 %v224_v47  ;;  %v221_v48 = vsel %vm220_vm3, %v216_v46, 0.0 }
 0x16e   :  { %222 = vadd.xlane.f32.xlu0 %v221_v48  ;;  %v266_v44 = vmul.f32 -10000.0, %v265_v42 }
 0x1fa   :  { %v226_v49 = vpop.xlane.xlu1 %225 }
 0x1fb   :  { %v229_v50 = vmul.f32 0.03125, %v226_v49  ;;  %v223_v51 = vpop.xlane.xlu0 %222 }
 0x1fc   :  { %v228_v52 = vmul.f32 0.03125, %v223_v51 }
 0x1fd   :  { %v231_v53 = vsub.f32 %v217_v45, %v229_v50  ;;  %v352_v45 = vsub.s32 0, %v351_v43 }
 0x1fe   :  { %v230_v54 = vsub.f32 %v216_v46, %v228_v52  ;;  %v268_v46 = vrot.slane %v266_v44, 1 }
 0x1ff   :  { %v233_v57 = vmul.f32 %v231_v53, %v231_v53  ;;  %v2765_v47 = vrot.slane %v266_v44, %v352_v45 }
 0x200   :  { %v232_v55 = vmul.f32 %v230_v54, %v230_v54  ;;  %v2767_v48 = vrot.slane %v268_v46, %v352_v45 }
 0x201   :  { %v237_v58 = vsel %vm220_vm3, %v233_v57, 0.0 }
 0x202   :  { %v234_v56 = vsel %vm220_vm3, %v232_v55, 0.0 }
 0x203   :  { %235 = vadd.xlane.f32.xlu0 %v234_v56 }
 0x207   :  { %238 = vadd.xlane.f32.xlu0 %v237_v58 }
 0x290   :  { %v236_v61 = vpop.xlane.xlu0 %235 }
 0x291   :  { %v240_v62 = vmul.f32 0.03125, %v236_v61 }
 0x293   :  { %v242_v63 = vadd.f32 1e-12, %v240_v62 }
 0x294   :  { %v239_v0 = vpop.xlane.xlu0 %238 }
 0x295   :  { %2434 = vrsqrt.f32 %v242_v63  ;;  %v241_v1 = vmul.f32 0.03125, %v239_v0 }
 0x297   :  { %v243_v2 = vadd.f32 1e-12, %v241_v1 }
 0x299   :  { %2436 = vrsqrt.f32 %v243_v2 }
 0x29f   :  { %v2435_v3 = vpop.eup %2434 }
 0x2a0   :  { %v246_v4 = vmul.f32 %v2435_v3, %v230_v54 }
 0x2a2   :  { %v254_v8 = vmul.f32 %v2029_v5, %v246_v4 }
 0x2a3   :  { %v2437_v6 = vpop.eup %2436 }
 0x2a4   :  { %v247_v7 = vmul.f32 %v2437_v6, %v231_v53  ;;  %v2707_v11 = vadd.f32 %v2030_v9, %v254_v8 }
 0x2a6   :  { %v255_v10 = vmul.f32 %v2029_v5, %v247_v7 }
 0x2a8   :  { %v2709_v12 = vadd.f32 %v2030_v9, %v255_v10 }
 0x2aa   :  { %v270_v13 = vpack.c.bf16 %v2709_v12, %v2707_v11 }
 0x2ac   :  { %2213 = vmatmul.mubr.msk.bf16.vlgmr.msra.gmra.mrb[0].mxu1 %vm220_vm3, %v270_v13 }
 0x2ad   :  { %2218 = vmatprep.mubr.msk.bf16.mxu1 %vm2520_vm4, %v2519_v14 }
 0x37f   :  { %v331_v16 = vpop.f32.mrb[0].mxu1 }
 0x380   :  { %v332_v17 = vadd.f32 %v2031_v15, %v331_v16  ;;  %v2214_v18 = vpop.f32.mrb[1].mxu1 }
 0x381   :  { %v334_v19 = vpop.f32.mrb[2].mxu1 }
 0x382   :  { %v335_v20 = vadd.f32 %v2031_v15, %v334_v19  ;;  %339 = vrot.lane.b32.xlu1 %v332_v17, %s2521_s7  ;;  %v2215_v21 = vpop.f32.mrb[3].mxu1  ;;  %v2720_v23 = vpack.c.bf16 %v332_v17, %v332_v17 }
 0x384   :  { %343 = vrot.lane.b32.xlu0 %v335_v20, %s2521_s7  ;;  %v2731_v29 = vpack.c.bf16 %v335_v20, %v335_v20 }
 0x386   :  { %359 = vrot.lane.b32.xlu1 %v2720_v23, %s2522_s29 }
 0x3f4   :  { %v340_v24 = vpop.permute.xlu1 %339 }
 0x3f5   :  { %v2725_v25 = vpack.c.bf16 %v340_v24, %v340_v24 }
 0x3f6   :  { %v344_v26 = vpop.permute.xlu0 %343 }
 0x3f7   :  { %v2727_v27 = vpack.c.bf16 %v344_v26, %v344_v26  ;;  %409 = vrot.lane.b32.xlu1 %v2725_v25, %s2522_s29 }
 0x3f8   :  { %v360_v28 = vpop.permute.xlu1 %359 }
 0x3f9   :  { %v366_v30 = vsel %vm361_vm5, %v360_v28, 0  ;;  %507 = vrot.lane.b32.xlu0 %v2727_v27, %s2522_s29 }
 0x3fa   :  { %2217 = vmatpush3.bf16.xpose.msra.mxu1 %v366_v30 }
 0x3fb   :  { %458 = vrot.lane.b32.xlu1 %v2731_v29, %s2522_s29  ;;  %2222 = vmatprep.subr.bf16.mxu1 %v2519_v14 }
 0x401   :  { %2219 = vmatmul.mubr.msk.bf16.vlgmr.msra.gmra.mrb[4].mxu1 %vm361_vm5, %v2720_v23 }
 0x402   :  { %2224 = vmatprep.mubr.msk.bf16.mxu1 %vm2520_vm4, %v2519_v14 }
 0x469   :  { %v410_v31 = vpop.permute.xlu1 %409 }
 0x46a   :  { %v415_v32 = vsel %vm361_vm5, %v410_v31, 0 }
 0x46b   :  { %2223 = vmatpush3.bf16.xpose.msra.mxu1 %v415_v32  ;;  %v508_v33 = vpop.permute.xlu0 %507 }
 0x46c   :  { %v513_v34 = vsel %vm361_vm5, %v508_v33, 0  ;;  %2228 = vmatprep.subr.bf16.mxu1 %v2519_v14 }
 0x46d   :  { %2235 = vmatpush3.bf16.xpose.msra.mxu0 %v513_v34  ;;  %v459_v35 = vpop.permute.xlu1 %458 }
 0x46e   :  { %2246 = vmatprep.subr.bf16.mxu0 %v2519_v14  ;;  %v464_v36 = vsel %vm361_vm5, %v459_v35, 0 }
 0x472   :  { %2225 = vmatmul.mubr.msk.bf16.vlgmr.msra.gmra.mrb[8].mxu1 %vm361_vm5, %v2725_v25 }
 0x473   :  { %2229 = vmatpush3.bf16.xpose.msra.mxu1 %v464_v36  ;;  %2230 = vmatprep.mubr.msk.bf16.mxu1 %vm2520_vm4, %v2519_v14 }
 0x474   :  { %2237 = vmatmul.mubr.msk.bf16.vlgmr.msra.gmra.mrb[4].mxu0 %vm361_vm5, %v2727_v27  ;;  %2240 = vmatprep.subr.bf16.mxu1 %v2519_v14 }
 0x475   :  { %2248 = vmatprep.mubr.msk.bf16.mxu0 %vm2520_vm4, %v2519_v14 }
 0x47a   :  { %2231 = vmatmul.mubr.msk.bf16.vlgmr.msra.gmra.mrb[12].mxu1 %vm361_vm5, %v2731_v29 }
 0x47b   :  { %2242 = vmatprep.mubr.msk.bf16.mxu1 %vm2520_vm4, %v2519_v14 }
 0x4d4   :  { %v402_v37 = vpop.f32.mrb[4].mxu1 }
 0x4d5   :  { %v2220_v38 = vpop.f32.mrb[5].mxu1  ;;  %v403_v54 = vadd.f32 %v402_v37, %v2765_v47 }
 0x4d6   :  { %v405_v39 = vpop.f32.mrb[6].mxu1 }
 0x4d7   :  { %v2221_v40 = vpop.f32.mrb[7].mxu1  ;;  %v556_v61 = vsel %vm555_vm6, %v403_v54, -inf }
 0x545   :  { %v451_v49 = vpop.f32.mrb[8].mxu1 }
 0x546   :  { %v452_v50 = vadd.f32 %v451_v49, %v2765_v47  ;;  %v2226_v51 = vpop.f32.mrb[9].mxu1 }
 0x547   :  { %v454_v52 = vpop.f32.mrb[10].mxu1  ;;  %v549_v53 = vpop.f32.mrb[4].mxu0 }
 0x548   :  { %v550_v55 = vadd.f32 %v549_v53, %v2767_v48  ;;  %v2227_v56 = vpop.f32.mrb[11].mxu1  ;;  %v2238_v22 = vpop.f32.mrb[5].mxu0  ;;  %v559_v57 = vsel %vm555_vm6, %v452_v50, -inf }
 0x549   :  { %v552_v58 = vpop.f32.mrb[6].mxu0  ;;  %560 = vmax.xlane.f32.xlu0 %v559_v57 }
 0x54a   :  { %v2239_v59 = vpop.f32.mrb[7].mxu0  ;;  %v565_v60 = vsel %vm555_vm6, %v550_v55, -inf }
 0x54b   :  { %566 = vmax.xlane.f32.xlu1 %v565_v60 }
 0x54d   :  { %557 = vmax.xlane.f32.xlu0 %v556_v61  ;;  %v500_v62 = vpop.f32.mrb[12].mxu1 }
 0x54e   :  { %v501_v63 = vadd.f32 %v500_v62, %v2767_v48  ;;  %v2232_v0 = vpop.f32.mrb[13].mxu1 }
 0x54f   :  { %v503_v1 = vpop.f32.mrb[14].mxu1 }
 0x550   :  { %v2233_v2 = vpop.f32.mrb[15].mxu1  ;;  %v562_v3 = vsel %vm555_vm6, %v501_v63, -inf }
 0x551   :  { %563 = vmax.xlane.f32.xlu0 %v562_v3 }
 0x5d6   :  { %v561_v4 = vpop.xlane.xlu0 %560 }
 0x5d7   :  { %v569_v5 = vsub.f32 %v452_v50, %v561_v4 }
 0x5d8   :  { %v567_v6 = vpop.xlane.xlu1 %566 }
 0x5d9   :  { %v574_v7 = vmul.f32 1.442695, %v569_v5  ;;  %v571_v8 = vsub.f32 %v550_v55, %v567_v6  ;;  %v2417_v55 = vld [vmem:[%s3079_s10 + $0x8] sm:$0xff]  }
 0x5da   :  { %v558_v17 = vpop.xlane.xlu0 %557 }
 0x5db   :  { %2438 = vpow2.f32 %v574_v7  ;;  %v578_v9 = vmul.f32 1.442695, %v571_v8  ;;  %v568_v19 = vsub.f32 %v403_v54, %v558_v17  ;;  %v2416_v54 = vld [vmem:[%s3079_s10] sm:$0xff]  }
 0x5dc   :  { %v2043_v17 = vld [vmem:[%s3080_s11] ss:$0 sm:$0xff] }
 0x5dd   :  { %2440 = vpow2.f32 %v578_v9  ;;  %v572_v21 = vmul.f32 1.442695, %v568_v19 }
 0x5de   :  { %v564_v18 = vpop.xlane.xlu0 %563 }
 0x5df   :  { %v570_v20 = vsub.f32 %v501_v63, %v564_v18  ;;  %2442 = vpow2.f32 %v572_v21 }
 0x5e1   :  { %v576_v24 = vmul.f32 1.442695, %v570_v20 }
 0x5e3   :  { %2444 = vpow2.f32 %v576_v24 }
 0x5e5   :  { %v2439_v10 = vpop.eup %2438 }
 0x5e6   :  { %v583_v13 = vsel %vm555_vm6, %v2439_v10, 0.0 }
 0x5e7   :  { %v2441_v15 = vpop.eup %2440  ;;  %584 = vadd.xlane.f32.xlu1 %v583_v13 }
 0x5e8   :  { %v589_v16 = vsel %vm555_vm6, %v2441_v15, 0.0 }
 0x5e9   :  { %590 = vadd.xlane.f32.xlu0 %v589_v16  ;;  %v2443_v26 = vpop.eup %2442 }
 0x5ea   :  { %v580_v30 = vsel %vm555_vm6, %v2443_v26, 0.0 }
 0x5ed   :  { %v2445_v28 = vpop.eup %2444 }
 0x5ee   :  { %v586_v31 = vsel %vm555_vm6, %v2445_v28, 0.0 }
 0x5f8   :  { %653 = vrot.lane.b32.xlu1 %v2725_v25, %s2523_s0 }
 0x5ff   :  { %749 = vrot.lane.b32.xlu0 %v2727_v27, %s2523_s0 }
 0x61c   :  { %581 = vadd.xlane.f32.xlu1 %v580_v30 }
 0x61e   :  { %587 = vadd.xlane.f32.xlu0 %v586_v31 }
 0x62d   :  { %604 = vrot.lane.b32.xlu1 %v2720_v23, %s2523_s0 }
 0x634   :  { %701 = vrot.lane.b32.xlu0 %v2731_v29, %s2523_s0 }
 0x674   :  { %v585_v25 = vpop.xlane.xlu1 %584 }
 0x675   :  { %2446 = vrcp.f32 %v585_v25 }
 0x676   :  { %v591_v27 = vpop.xlane.xlu0 %590 }
 0x677   :  { %2448 = vrcp.f32 %v591_v27 }
 0x678   :  { %v654_v32 = vpop.permute.xlu1 %653 }
 0x679   :  { %v659_v33 = vsel %vm609_vm7, %v654_v32, 0 }
 0x67a   :  { %2247 = vmatpush3.bf16.msra.mxu0 %v659_v33  ;;  %v750_v36 = vpop.permute.xlu0 %749 }
 0x67b   :  { %2258 = vmatprep.subr.bf16.mxu0 %v2519_v14  ;;  %v755_v23 = vsel %vm609_vm7, %v750_v36, 0 }
 0x67f   :  { %v2447_v34 = vpop.eup %2446 }
 0x680   :  { %v597_v35 = vmul.f32 %v2447_v34, %v2439_v10 }
 0x681   :  { %v2449_v38 = vpop.eup %2448 }
 0x682   :  { %v601_v37 = vpack.c.bf16 %v597_v35, %v597_v35  ;;  %v599_v29 = vmul.f32 %v2449_v38, %v2441_v15 }
 0x684   :  { %2249 = vmatmul.mubr.msk.bf16.vlgmr.msra.gmra.mrb[8].mxu0 %vm555_vm6, %v601_v37  ;;  %v603_v39 = vpack.c.bf16 %v599_v29, %v599_v29  ;;  %v2419_v29 = vld [vmem:[%s3083_s14 + $0x8] sm:$0xff]  }
 0x685   :  { %2259 = vmatpush3.bf16.msra.mxu0 %v755_v23  ;;  %2260 = vmatprep.mubr.msk.bf16.mxu0 %vm2520_vm4, %v2519_v14 }
 0x686   :  { %2272 = vmatprep.subr.bf16.mxu0 %v2519_v14 }
 0x68c   :  { %2261 = vmatmul.mubr.msk.bf16.vlgmr.msra.gmra.mrb[12].mxu0 %vm555_vm6, %v603_v39 }
 0x68d   :  { %2276 = vmatprep.mubr.msk.bf16.mxu0 %vm2520_vm4, %v2519_v14 }
 0x6a9   :  { %v582_v40 = vpop.xlane.xlu1 %581 }
 0x6aa   :  { %2450 = vrcp.f32 %v582_v40 }
 0x6ab   :  { %v588_v41 = vpop.xlane.xlu0 %587 }
 0x6ac   :  { %2452 = vrcp.f32 %v588_v41 }
 0x6ad   :  { %v605_v42 = vpop.permute.xlu1 %604 }
 0x6ae   :  { %v611_v43 = vsel %vm609_vm7, %v605_v42, 0 }
 0x6af   :  { %2241 = vmatpush3.bf16.msra.mxu1 %v611_v43  ;;  %v702_v46 = vpop.permute.xlu0 %701 }
 0x6b0   :  { %2252 = vmatprep.subr.bf16.mxu1 %v2519_v14  ;;  %v707_v51 = vsel %vm609_vm7, %v702_v46, 0  ;;  %v2047_v46 = vld [vmem:[%s3081_s12] ss:$0 sm:$0xff] }
 0x6b4   :  { %v2451_v44 = vpop.eup %2450 }
 0x6b5   :  { %v596_v45 = vmul.f32 %v2451_v44, %v2443_v26 }
 0x6b6   :  { %v2453_v50 = vpop.eup %2452 }
 0x6b7   :  { %v600_v49 = vpack.c.bf16 %v596_v45, %v596_v45  ;;  %v598_v52 = vmul.f32 %v2453_v50, %v2445_v28 }
 0x6b9   :  { %2243 = vmatmul.mubr.msk.bf16.vlgmr.msra.gmra.mrb[16].mxu1 %vm555_vm6, %v600_v49  ;;  %v602_v53 = vpack.c.bf16 %v598_v52, %v598_v52 }
 0x6ba   :  { %2253 = vmatpush3.bf16.msra.mxu1 %v707_v51  ;;  %2254 = vmatprep.mubr.msk.bf16.mxu1 %vm2520_vm4, %v2519_v14 }
 0x6bb   :  { %2264 = vmatprep.subr.bf16.mxu1 %v2519_v14 }
 0x6c1   :  { %2255 = vmatmul.mubr.msk.bf16.vlgmr.msra.gmra.mrb[20].mxu1 %vm555_vm6, %v602_v53  ;;  %v2048_v53 = vld [vmem:[%s3082_s13] ss:$0 sm:$0xff] }
 0x6c2   :  { %2268 = vmatprep.mubr.msk.bf16.mxu1 %vm2520_vm4, %v2519_v14  ;;  %2265 = vmatpush3.bf16.msra.mxu1 %v2416_v54 }
 0x6c3   :  { %2266 = vmatprep.subr.bf16.mxu1 %v2519_v14 }
 0x6c6   :  { %2267 = vmatpush3.bf16.msra.mxu1 %v2417_v55 }
 0x6c7   :  { %2280 = vmatprep.subr.bf16.mxu1 %v2519_v14 }
 0x757   :  { %v695_v56 = vpop.f32.mrb[8].mxu0 }
 0x758   :  { %v2250_v22 = vpop.f32.mrb[9].mxu0 }
 0x759   :  { %v698_v57 = vpop.f32.mrb[10].mxu0 }
 0x75a   :  { %v2251_v58 = vpop.f32.mrb[11].mxu0  ;;  %v2420_v57 = vld [vmem:[%s3085_s16] sm:$0xff]  }
 0x75b   :  { %v2421_v58 = vld [vmem:[%s3085_s16 + $0x8] sm:$0xff]  }
 0x75f   :  { %v791_v59 = vpop.f32.mrb[12].mxu0 }
 0x760   :  { %v2404_v60 = vpack.i.bf16 %v791_v59, %v695_v56  ;;  %v2262_v61 = vpop.f32.mrb[13].mxu0  ;;  %v2422_v59 = vld [vmem:[%s3085_s16 + $0x10] sm:$0xff]  }
 0x761   :  { %v794_v62 = vpop.f32.mrb[14].mxu0  ;;  %v2049_v61 = vld [vmem:[%s3106_s28] ss:$0 sm:$0xff] }
 0x762   :  { %2405 = vrot.lane.b32.xlu1 %v2404_v60, %s2524_s24  ;;  %v2263_v63 = vpop.f32.mrb[15].mxu0  ;;  %v2423_v60 = vld [vmem:[%s3085_s16 + $0x18] sm:$0xff]  }
 0x78c   :  { %v647_v0 = vpop.f32.mrb[16].mxu1 }
 0x78d   :  { %v2244_v1 = vpop.f32.mrb[17].mxu1 }
 0x78e   :  { %v650_v2 = vpop.f32.mrb[18].mxu1 }
 0x78f   :  { %v2245_v3 = vpop.f32.mrb[19].mxu1 }
 0x794   :  { %v743_v4 = vpop.f32.mrb[20].mxu1 }
 0x795   :  { %v2256_v5 = vpop.f32.mrb[21].mxu1 }
 0x796   :  { %v746_v6 = vpop.f32.mrb[22].mxu1 }
 0x797   :  { %v2257_v7 = vpop.f32.mrb[23].mxu1 }
 0x7d4   :  { %v2406_v8 = vpop.permute.xlu1 %2405 }
 0x7d5   :  { %v2408_v9 = vunpack.i.h.bf16 %v2406_v8  ;;  %v2407_v10 = vunpack.i.l.bf16 %v2406_v8 }
 0x7d7   :  { %v801_v13 = vsel %vm361_vm5, %v647_v0, %v2407_v10  ;;  %v806_v15 = vsel %vm361_vm5, %v743_v4, %v2408_v9 }
 0x7d8   :  { %v807_v16 = vpack.c.bf16 %v806_v15, %v801_v13 }
 0x7da   :  { %2269 = vmatmul.mubr.msk.bf16.vlgmr.msra.gmra.mrb[24].mxu1 %vm220_vm3, %v807_v16 }
 0x7db   :  { %2288 = vmatprep.mubr.msk.bf16.mxu1 %vm2520_vm4, %v2519_v14  ;;  %2281 = vmatpush3.bf16.msra.mxu1 %v2420_v57 }
 0x7dc   :  { %2282 = vmatprep.subr.bf16.mxu1 %v2519_v14 }
 0x7df   :  { %2283 = vmatpush3.bf16.msra.mxu1 %v2421_v58 }
 0x7e0   :  { %2284 = vmatprep.subr.bf16.mxu1 %v2519_v14 }
 0x7e3   :  { %2285 = vmatpush3.bf16.msra.mxu1 %v2422_v59 }
 0x7e4   :  { %2286 = vmatprep.subr.bf16.mxu1 %v2519_v14 }
 0x7e7   :  { %2287 = vmatpush3.bf16.msra.mxu1 %v2423_v60 }
 0x7e8   :  { %2306 = vmatprep.subr.bf16.mxu1 %v2519_v14 }
 0x8ad   :  { %v868_v18 = vpop.f32.mrb[24].mxu1 }
 0x8ae   :  { %v869_v19 = vadd.f32 %v2043_v17, %v868_v18  ;;  %v2270_v20 = vpop.f32.mrb[25].mxu1 }
 0x8af   :  { %v871_v21 = vpop.f32.mrb[26].mxu1 }
 0x8b0   :  { %v872_v24 = vadd.f32 %v2043_v17, %v871_v21  ;;  %v2271_v26 = vpop.f32.mrb[27].mxu1  ;;  %v875_v28 = vadd.f32 %v869_v19, %v2707_v11 }
 0x8b2   :  { %v879_v30 = vsel %vm220_vm3, %v875_v28, 0.0  ;;  %v876_v31 = vadd.f32 %v872_v24, %v2709_v12  ;;  %v2418_v12 = vld [vmem:[%s3083_s14] sm:$0xff]  }
 0x8b3   :  { %880 = vadd.xlane.f32.xlu1 %v879_v30  ;;  %2273 = vmatpush3.bf16.msra.mxu0 %v2418_v12 }
 0x8b4   :  { %v882_v25 = vsel %vm220_vm3, %v876_v31, 0.0  ;;  %2274 = vmatprep.subr.bf16.mxu0 %v2519_v14 }
 0x8b5   :  { %883 = vadd.xlane.f32.xlu0 %v882_v25 }
 0x8b7   :  { %2275 = vmatpush3.bf16.msra.mxu0 %v2419_v29 }
 0x8b8   :  { %2292 = vmatprep.subr.bf16.mxu0 %v2519_v14 }
 0x940   :  { %v881_v27 = vpop.xlane.xlu1 %880 }
 0x941   :  { %v885_v32 = vmul.f32 0.03125, %v881_v27 }
 0x942   :  { %v884_v33 = vpop.xlane.xlu0 %883 }
 0x943   :  { %v887_v34 = vsub.f32 %v875_v28, %v885_v32  ;;  %v886_v35 = vmul.f32 0.03125, %v884_v33 }
 0x945   :  { %v888_v36 = vsub.f32 %v876_v31, %v886_v35  ;;  %v889_v37 = vmul.f32 %v887_v34, %v887_v34  ;;  %v2053_v31 = vld [vmem:[%s3086_s17] ss:$0 sm:$0xff] }
 0x947   :  { %v891_v38 = vsel %vm220_vm3, %v889_v37, 0.0  ;;  %v890_v23 = vmul.f32 %v888_v36, %v888_v36 }
 0x948   :  { %892 = vadd.xlane.f32.xlu0 %v891_v38 }
 0x949   :  { %v894_v11 = vsel %vm220_vm3, %v890_v23, 0.0 }
 0x94a   :  { %895 = vadd.xlane.f32.xlu1 %v894_v11 }
 0x9d5   :  { %v893_v39 = vpop.xlane.xlu0 %892 }
 0x9d6   :  { %v897_v40 = vmul.f32 0.03125, %v893_v39 }
 0x9d7   :  { %v896_v41 = vpop.xlane.xlu1 %895 }
 0x9d8   :  { %v899_v42 = vadd.f32 1e-12, %v897_v40  ;;  %v898_v43 = vmul.f32 0.03125, %v896_v41 }
 0x9da   :  { %2454 = vrsqrt.f32 %v899_v42  ;;  %v900_v44 = vadd.f32 1e-12, %v898_v43 }
 0x9dc   :  { %2456 = vrsqrt.f32 %v900_v44 }
 0x9e4   :  { %v2455_v45 = vpop.eup %2454 }
 0x9e5   :  { %v903_v49 = vmul.f32 %v2455_v45, %v887_v34 }
 0x9e6   :  { %v2457_v50 = vpop.eup %2456 }
 0x9e7   :  { %v911_v51 = vmul.f32 %v2047_v46, %v903_v49  ;;  %v904_v52 = vmul.f32 %v2457_v50, %v888_v36  ;;  %v2425_v49 = vld [vmem:[%s3077_s8 + $0x18] sm:$0xff]  }
 0x9e9   :  { %v912_v54 = vmul.f32 %v2047_v46, %v904_v52  ;;  %v919_v55 = vadd.f32 %v2048_v53, %v911_v51  ;;  %v2424_v46 = vld [vmem:[%s3077_s8 + $0x10] sm:$0xff]  }
 0x9eb   :  { %v920_v56 = vadd.f32 %v2048_v53, %v912_v54 }
 0x9ed   :  { %v921_v22 = vpack.c.bf16 %v920_v56, %v919_v55 }
 0x9ef   :  { %2277 = vmatmul.mubr.msk.bf16.vlgmr.msra.gmra.mrb[16].mxu0 %vm220_vm3, %v921_v22  ;;  %v2059_v22 = vld [vmem:[%s3087_s18] ss:$0 sm:$0xff] }
 0x9f0   :  { %2296 = vmatprep.mubr.msk.bf16.mxu0 %vm2520_vm4, %v2519_v14  ;;  %2293 = vmatpush3.bf16.msra.mxu0 %v2424_v46 }
 0x9f1   :  { %2294 = vmatprep.subr.bf16.mxu0 %v2519_v14 }
 0x9f4   :  { %2295 = vmatpush3.bf16.msra.mxu0 %v2425_v49 }
 0x9f5   :  { %2300 = vmatprep.subr.bf16.mxu0 %v2519_v14 }
 0xac2   :  { %v982_v62 = vpop.f32.mrb[16].mxu0 }
 0xac3   :  { %v983_v63 = vadd.f32 %v2049_v61, %v982_v62  ;;  %v2278_v0 = vpop.f32.mrb[17].mxu0 }
 0xac4   :  { %v985_v1 = vpop.f32.mrb[18].mxu0 }
 0xac5   :  { %v991_v2 = vmul.f32 0.044715, %v983_v63  ;;  %v986_v3 = vadd.f32 %v2049_v61, %v985_v1  ;;  %v2279_v4 = vpop.f32.mrb[19].mxu0  ;;  %v989_v20 = vmul.f32 0.5, %v983_v63  ;;  %v2060_v61 = vld [vmem:[%s3088_s19] ss:$0 sm:$0xff] }
 0xac7   :  { %v993_v5 = vmul.f32 %v991_v2, %v983_v63  ;;  %v992_v6 = vmul.f32 0.044715, %v986_v3  ;;  %v990_v21 = vmul.f32 0.5, %v986_v3  ;;  %v2066_v2 = vld [vmem:[%s3078_s9 + $0x1] ss:$0 sm:$0xff] }
 0xac9   :  { %v995_v7 = vmul.f32 %v993_v5, %v983_v63  ;;  %v994_v8 = vmul.f32 %v992_v6, %v986_v3 }
 0xacb   :  { %v997_v9 = vadd.f32 %v995_v7, %v983_v63  ;;  %v996_v10 = vmul.f32 %v994_v8, %v986_v3 }
 0xacd   :  { %v999_v13 = vmul.f32 0.7978846, %v997_v9  ;;  %v998_v15 = vadd.f32 %v996_v10, %v986_v3 }
 0xacf   :  { %2458 = vtanh.f32 %v999_v13  ;;  %v1000_v16 = vmul.f32 0.7978846, %v998_v15 }
 0xad1   :  { %2460 = vtanh.f32 %v1000_v16 }
 0xad9   :  { %v2459_v17 = vpop.eup %2458 }
 0xada   :  { %v1003_v18 = vadd.f32 1.0, %v2459_v17 }
 0xadb   :  { %v2461_v19 = vpop.eup %2460 }
 0xadc   :  { %v1004_v24 = vadd.f32 1.0, %v2461_v19  ;;  %v1005_v26 = vmul.f32 %v1003_v18, %v989_v20 }
 0xade   :  { %v1006_v28 = vmul.f32 %v1004_v24, %v990_v21 }
 0xae0   :  { %v1007_v30 = vpack.c.bf16 %v1006_v28, %v1005_v26 }
 0xae2   :  { %2289 = vmatmul.mubr.msk.bf16.vlgmr.msra.gmra.mrb[28].mxu1 %vm134_vm0, %v1007_v30 }
 0xae3   :  { %2308 = vmatprep.mubr.msk.bf16.mxu1 %vm2520_vm4, %v2519_v14 }
 0xbb5   :  { %v1084_v25 = vpop.f32.mrb[28].mxu1 }
 0xbb6   :  { %v1085_v27 = vadd.f32 %v2053_v31, %v1084_v25  ;;  %v2290_v32 = vpop.f32.mrb[29].mxu1 }
 0xbb7   :  { %v1087_v33 = vpop.f32.mrb[30].mxu1 }
 0xbb8   :  { %v1088_v34 = vadd.f32 %v2053_v31, %v1087_v33  ;;  %v2291_v35 = vpop.f32.mrb[31].mxu1  ;;  %v1091_v36 = vadd.f32 %v1085_v27, %v919_v55 }
 0xbba   :  { %v1095_v37 = vsel %vm220_vm3, %v1091_v36, 0.0  ;;  %v1092_v38 = vadd.f32 %v1088_v34, %v920_v56 }
 0xbbb   :  { %1096 = vadd.xlane.f32.xlu0 %v1095_v37 }
 0xbbc   :  { %v1098_v23 = vsel %vm220_vm3, %v1092_v38, 0.0 }
 0xbbd   :  { %1099 = vadd.xlane.f32.xlu1 %v1098_v23 }
 0xc48   :  { %v1097_v11 = vpop.xlane.xlu0 %1096 }
 0xc49   :  { %v1101_v12 = vmul.f32 0.03125, %v1097_v11 }
 0xc4a   :  { %v1100_v29 = vpop.xlane.xlu1 %1099 }
 0xc4b   :  { %v1103_v39 = vsub.f32 %v1091_v36, %v1101_v12  ;;  %v1102_v40 = vmul.f32 0.03125, %v1100_v29 }
 0xc4d   :  { %v1104_v41 = vsub.f32 %v1092_v38, %v1102_v40  ;;  %v1105_v42 = vmul.f32 %v1103_v39, %v1103_v39 }
 0xc4f   :  { %v1107_v43 = vsel %vm220_vm3, %v1105_v42, 0.0  ;;  %v1106_v44 = vmul.f32 %v1104_v41, %v1104_v41 }
 0xc50   :  { %1108 = vadd.xlane.f32.xlu0 %v1107_v43 }
 0xc51   :  { %v1110_v45 = vsel %vm220_vm3, %v1106_v44, 0.0 }
 0xc52   :  { %1111 = vadd.xlane.f32.xlu1 %v1110_v45 }
 0xcdd   :  { %v1109_v50 = vpop.xlane.xlu0 %1108 }
 0xcde   :  { %v1113_v51 = vmul.f32 0.03125, %v1109_v50 }
 0xcdf   :  { %v1112_v52 = vpop.xlane.xlu1 %1111 }
 0xce0   :  { %v1115_v53 = vadd.f32 1e-12, %v1113_v51  ;;  %v1114_v54 = vmul.f32 0.03125, %v1112_v52 }
 0xce2   :  { %2462 = vrsqrt.f32 %v1115_v53  ;;  %v1116_v55 = vadd.f32 1e-12, %v1114_v54 }
 0xce4   :  { %2464 = vrsqrt.f32 %v1116_v55 }
 0xcec   :  { %v2463_v56 = vpop.eup %2462 }
 0xced   :  { %v1119_v57 = vmul.f32 %v2463_v56, %v1103_v39 }
 0xcee   :  { %v2465_v58 = vpop.eup %2464 }
 0xcef   :  { %v1127_v59 = vmul.f32 %v2059_v22, %v1119_v57  ;;  %v1120_v60 = vmul.f32 %v2465_v58, %v1104_v41 }
 0xcf1   :  { %v1128_v62 = vmul.f32 %v2059_v22, %v1120_v60  ;;  %v2892_v63 = vadd.f32 %v2060_v61, %v1127_v59 }
 0xcf3   :  { %v2894_v0 = vadd.f32 %v2060_v61, %v1128_v62 }
 0xcf5   :  { %v1137_v1 = vpack.c.bf16 %v2894_v0, %v2892_v63 }
 0xcf7   :  { %2297 = vmatmul.mubr.msk.bf16.vlgmr.msra.gmra.mrb[20].mxu0 %vm220_vm3, %v1137_v1 }
 0xcf8   :  { %2302 = vmatprep.mubr.msk.bf16.mxu0 %vm2520_vm4, %v2519_v14 }
 0xdca   :  { %v1200_v3 = vpop.f32.mrb[20].mxu0 }
 0xdcb   :  { %v1201_v4 = vadd.f32 %v2066_v2, %v1200_v3  ;;  %v2298_v5 = vpop.f32.mrb[21].mxu0 }
 0xdcc   :  { %v1203_v6 = vpop.f32.mrb[22].mxu0 }
 0xdcd   :  { %v1204_v7 = vadd.f32 %v2066_v2, %v1203_v6  ;;  %1208 = vrot.lane.b32.xlu0 %v1201_v4, %s2521_s7  ;;  %v2299_v8 = vpop.f32.mrb[23].mxu0  ;;  %v2912_v16 = vpack.c.bf16 %v1201_v4, %v1201_v4 }
 0xdcf   :  { %1212 = vrot.lane.b32.xlu1 %v1204_v7, %s2521_s7  ;;  %v2916_v17 = vpack.c.bf16 %v1204_v7, %v1204_v7 }
 0xe3f   :  { %v1209_v9 = vpop.permute.xlu0 %1208 }
 0xe40   :  { %v2906_v10 = vpack.c.bf16 %v1209_v9, %v1209_v9 }
 0xe41   :  { %v1213_v13 = vpop.permute.xlu1 %1212 }
 0xe42   :  { %v2908_v15 = vpack.c.bf16 %v1213_v13, %v1213_v13  ;;  %1269 = vrot.lane.b32.xlu1 %v2906_v10, %s2522_s29 }
 0xe44   :  { %1367 = vrot.lane.b32.xlu0 %v2908_v15, %s2522_s29 }
 0xe46   :  { %1220 = vrot.lane.b32.xlu1 %v2912_v16, %s2522_s29 }
 0xe48   :  { %1318 = vrot.lane.b32.xlu0 %v2916_v17, %s2522_s29  ;;  %s2525_s29 = smov [#allocation2]  }
 0xeb4   :  { %v1270_v18 = vpop.permute.xlu1 %1269 }
 0xeb5   :  { %v1275_v19 = vsel %vm361_vm5, %v1270_v18, 0 }
 0xeb6   :  { %2307 = vmatpush3.bf16.xpose.msra.mxu1 %v1275_v19  ;;  %v1368_v20 = vpop.permute.xlu0 %1367 }
 0xeb7   :  { %2318 = vmatprep.subr.bf16.mxu1 %v2519_v14  ;;  %v1373_v26 = vsel %vm361_vm5, %v1368_v20, 0 }
 0xeb8   :  { %v1221_v21 = vpop.permute.xlu1 %1220 }
 0xeb9   :  { %v1226_v24 = vsel %vm361_vm5, %v1221_v21, 0 }
 0xeba   :  { %2301 = vmatpush3.bf16.xpose.msra.mxu0 %v1226_v24  ;;  %v1319_v28 = vpop.permute.xlu0 %1318 }
 0xebb   :  { %2312 = vmatprep.subr.bf16.mxu0 %v2519_v14  ;;  %v1324_v30 = vsel %vm361_vm5, %v1319_v28, 0 }
 0xebd   :  { %2309 = vmatmul.mubr.msk.bf16.vlgmr.msra.gmra.mrb[32].mxu1 %vm361_vm5, %v2906_v10 }
 0xebe   :  { %2319 = vmatpush3.bf16.xpose.msra.mxu1 %v1373_v26  ;;  %2320 = vmatprep.mubr.msk.bf16.mxu1 %vm2520_vm4, %v2519_v14 }
 0xebf   :  { %2330 = vmatprep.subr.bf16.mxu1 %v2519_v14 }
 0xec1   :  { %2303 = vmatmul.mubr.msk.bf16.vlgmr.msra.gmra.mrb[24].mxu0 %vm361_vm5, %v2912_v16 }
 0xec2   :  { %2313 = vmatpush3.bf16.xpose.msra.mxu0 %v1324_v30  ;;  %2314 = vmatprep.mubr.msk.bf16.mxu0 %vm2520_vm4, %v2519_v14 }
 0xec3   :  { %2324 = vmatprep.subr.bf16.mxu0 %v2519_v14 }
 0xec5   :  { %2321 = vmatmul.mubr.msk.bf16.vlgmr.msra.gmra.mrb[36].mxu1 %vm361_vm5, %v2908_v15 }
 0xec6   :  { %2332 = vmatprep.mubr.msk.bf16.mxu1 %vm2520_vm4, %v2519_v14 }
 0xec9   :  { %2315 = vmatmul.mubr.msk.bf16.vlgmr.msra.gmra.mrb[28].mxu0 %vm361_vm5, %v2916_v17 }
 0xeca   :  { %2326 = vmatprep.mubr.msk.bf16.mxu0 %vm2520_vm4, %v2519_v14 }
 0xf90   :  { %v1311_v31 = vpop.f32.mrb[32].mxu1 }
 0xf91   :  { %v1312_v25 = vadd.f32 %v1311_v31, %v2765_v47  ;;  %v2310_v27 = vpop.f32.mrb[33].mxu1 }
 0xf92   :  { %v1314_v32 = vpop.f32.mrb[34].mxu1 }
 0xf93   :  { %v2311_v33 = vpop.f32.mrb[35].mxu1  ;;  %v1418_v34 = vsel %vm555_vm6, %v1312_v25, -inf }
 0xf94   :  { %v1262_v35 = vpop.f32.mrb[24].mxu0  ;;  %1419 = vmax.xlane.f32.xlu1 %v1418_v34 }
 0xf95   :  { %v2304_v36 = vpop.f32.mrb[25].mxu0  ;;  %v1263_v39 = vadd.f32 %v1262_v35, %v2765_v47 }
 0xf96   :  { %v1265_v37 = vpop.f32.mrb[26].mxu0  ;;  %v2426_v36 = vld [vmem:[%s3079_s10 + $0x10] sm:$0xff]  }
 0xf97   :  { %v2305_v38 = vpop.f32.mrb[27].mxu0  ;;  %v1415_v50 = vsel %vm555_vm6, %v1263_v39, -inf  ;;  %v2427_v37 = vld [vmem:[%s3079_s10 + $0x18] sm:$0xff]  }
 0xf98   :  { %v1409_v23 = vpop.f32.mrb[36].mxu1 }
 0xf99   :  { %v1410_v11 = vadd.f32 %v1409_v23, %v2767_v48  ;;  %v2322_v12 = vpop.f32.mrb[37].mxu1 }
 0xf9a   :  { %v1412_v29 = vpop.f32.mrb[38].mxu1 }
 0xf9b   :  { %v2323_v40 = vpop.f32.mrb[39].mxu1  ;;  %v1424_v41 = vsel %vm555_vm6, %v1410_v11, -inf }
 0xf9c   :  { %v1360_v42 = vpop.f32.mrb[28].mxu0  ;;  %1425 = vmax.xlane.f32.xlu0 %v1424_v41 }
 0xf9d   :  { %v1361_v43 = vadd.f32 %v1360_v42, %v2767_v48  ;;  %v2316_v44 = vpop.f32.mrb[29].mxu0 }
 0xf9e   :  { %v1363_v45 = vpop.f32.mrb[30].mxu0 }
 0xf9f   :  { %v2317_v46 = vpop.f32.mrb[31].mxu0  ;;  %v1421_v49 = vsel %vm555_vm6, %v1361_v43, -inf }
 0xfa0   :  { %1422 = vmax.xlane.f32.xlu1 %v1421_v49  ;;  %1416 = vmax.xlane.f32.xlu0 %v1415_v50 }
0x1021   :  { %v1420_v51 = vpop.xlane.xlu1 %1419 }
0x1022   :  { %v1428_v52 = vsub.f32 %v1312_v25, %v1420_v51 }
0x1024   :  { %v1433_v53 = vmul.f32 1.442695, %v1428_v52 }
0x1026   :  { %2466 = vpow2.f32 %v1433_v53 }
0x1029   :  { %v1426_v47 = vpop.xlane.xlu0 %1425 }
0x102a   :  { %v1430_v54 = vsub.f32 %v1410_v11, %v1426_v47 }
0x102c   :  { %v1437_v55 = vmul.f32 1.442695, %v1430_v54 }
0x102d   :  { %v1423_v58 = vpop.xlane.xlu1 %1422  ;;  %v1417_v61 = vpop.xlane.xlu0 %1416 }
0x102e   :  { %2468 = vpow2.f32 %v1437_v55  ;;  %v1429_v59 = vsub.f32 %v1361_v43, %v1423_v58  ;;  %v1427_v62 = vsub.f32 %v1263_v39, %v1417_v61 }
0x1030   :  { %v2467_v56 = vpop.eup %2466  ;;  %v1435_v60 = vmul.f32 1.442695, %v1429_v59  ;;  %v1431_v1 = vmul.f32 1.442695, %v1427_v62 }
0x1031   :  { %v1442_v48 = vsel %vm555_vm6, %v2467_v56, 0.0 }
0x1032   :  { %1443 = vadd.xlane.f32.xlu0 %v1442_v48  ;;  %2470 = vpow2.f32 %v1435_v60 }
0x1033   :  { %2472 = vpow2.f32 %v1431_v1 }
0x1038   :  { %v2469_v22 = vpop.eup %2468 }
0x1039   :  { %v1448_v57 = vsel %vm555_vm6, %v2469_v22, 0.0 }
0x103a   :  { %1449 = vadd.xlane.f32.xlu1 %v1448_v57 }
0x103c   :  { %v2471_v2 = vpop.eup %2470 }
0x103d   :  { %v1445_v3 = vsel %vm555_vm6, %v2471_v2, 0.0  ;;  %v2473_v4 = vpop.eup %2472 }
0x103e   :  { %v1439_v5 = vsel %vm555_vm6, %v2473_v4, 0.0 }
0x1048   :  { %1511 = vrot.lane.b32.xlu0 %v2906_v10, %s2523_s0 }
0x104b   :  { %1607 = vrot.lane.b32.xlu1 %v2908_v15, %s2523_s0 }
0x1067   :  { %1446 = vadd.xlane.f32.xlu0 %v1445_v3 }
0x106f   :  { %1440 = vadd.xlane.f32.xlu1 %v1439_v5 }
0x107d   :  { %1463 = vrot.lane.b32.xlu0 %v2912_v16, %s2523_s0 }
0x1080   :  { %1559 = vrot.lane.b32.xlu1 %v2916_v17, %s2523_s0  ;;  %s2012_s0 = sshll.u32 %s2525_s29, 4  ;;  %s2013_s0 = int_to_ptr.vmem [resolvable:$true] %s2012_s0 }
0x1081   :  { %s2494_s10 = scalar_lea.vmem %s2013_s0, 256  ;;  %p2499_p1 = scmp.lt.s32.totalorder %s2013_s0, %s2013_s0 }
0x1082   :  { %p2495_p0 = scmp.ne.s32.totalorder %s2013_s0, %s2494_s10  ;;  %p2500_p2 = scmp.lt.s32.totalorder %s2494_s10, %s2494_s10 }
0x1084   :  { %p2501_p3 = por %p2500_p2, %p2499_p1 }
0x1086   :  { %p2502_p4 = pnand %p2501_p3, %p2495_p0 }
0x10bf   :  { %v1444_v6 = vpop.xlane.xlu0 %1443 }
0x10c0   :  { %2474 = vrcp.f32 %v1444_v6 }
0x10c3   :  { %v1512_v7 = vpop.permute.xlu0 %1511 }
0x10c4   :  { %v1517_v8 = vsel %vm609_vm7, %v1512_v7, 0 }
0x10c5   :  { %2331 = vmatpush3.bf16.msra.mxu1 %v1517_v8 }
0x10c6   :  { %2342 = vmatprep.subr.bf16.mxu1 %v2519_v14 }
0x10c7   :  { %v1450_v9 = vpop.xlane.xlu1 %1449 }
0x10c8   :  { %2476 = vrcp.f32 %v1450_v9 }
0x10ca   :  { %v2475_v10 = vpop.eup %2474 }
0x10cb   :  { %v1456_v13 = vmul.f32 %v2475_v10, %v2467_v56  ;;  %v1608_v15 = vpop.permute.xlu1 %1607 }
0x10cc   :  { %v1613_v19 = vsel %vm609_vm7, %v1608_v15, 0 }
0x10cd   :  { %v1460_v18 = vpack.c.bf16 %v1456_v13, %v1456_v13 }
0x10cf   :  { %2333 = vmatmul.mubr.msk.bf16.vlgmr.msra.gmra.mrb[40].mxu1 %vm555_vm6, %v1460_v18 }
0x10d0   :  { %2343 = vmatpush3.bf16.msra.mxu1 %v1613_v19  ;;  %2344 = vmatprep.mubr.msk.bf16.mxu1 %vm2520_vm4, %v2519_v14  ;;  %v2429_v19 = vld [vmem:[%s3083_s14 + $0x18] sm:$0xff]  }
0x10d1   :  { %2356 = vmatprep.subr.bf16.mxu1 %v2519_v14 }
0x10d2   :  { %v2477_v16 = vpop.eup %2476 }
0x10d3   :  { %v1458_v17 = vmul.f32 %v2477_v16, %v2469_v22  ;;  %v2083_v22 = vld [vmem:[%s3080_s11 + $0x1] ss:$0 sm:$0xff] }
0x10d5   :  { %v1462_v20 = vpack.c.bf16 %v1458_v17, %v1458_v17 }
0x10d7   :  { %2345 = vmatmul.mubr.msk.bf16.vlgmr.msra.gmra.mrb[44].mxu1 %vm555_vm6, %v1462_v20 }
0x10d8   :  { %2360 = vmatprep.mubr.msk.bf16.mxu1 %vm2520_vm4, %v2519_v14 }
0x10f4   :  { %v1447_v21 = vpop.xlane.xlu0 %1446 }
0x10f8   :  { %v1464_v24 = vpop.permute.xlu0 %1463 }
0x10f9   :  { %v1469_v26 = vsel %vm609_vm7, %v1464_v24, 0 }
0x10fa   :  { %2325 = vmatpush3.bf16.msra.mxu0 %v1469_v26 }
0x10fb   :  { %2336 = vmatprep.subr.bf16.mxu0 %v2519_v14 }
0x10fc   :  { %v1441_v28 = vpop.xlane.xlu1 %1440 }
0x10fd   :  { %2478 = vrcp.f32 %v1441_v28 }
0x10fe   :  { %2480 = vrcp.f32 %v1447_v21 }
0x1100   :  { %v1560_v25 = vpop.permute.xlu1 %1559 }
0x1101   :  { %v1565_v33 = vsel %vm609_vm7, %v1560_v25, 0 }
0x1107   :  { %v2479_v30 = vpop.eup %2478 }
0x1108   :  { %v1455_v31 = vmul.f32 %v2479_v30, %v2473_v4  ;;  %v2481_v32 = vpop.eup %2480 }
0x1109   :  { %v1457_v34 = vmul.f32 %v2481_v32, %v2471_v2 }
0x110a   :  { %v1459_v27 = vpack.c.bf16 %v1455_v31, %v1455_v31  ;;  %v2089_v31 = vld [vmem:[%s3081_s12 + $0x1] ss:$0 sm:$0xff] }
0x110b   :  { %v1461_v35 = vpack.c.bf16 %v1457_v34, %v1457_v34 }
0x110c   :  { %2327 = vmatmul.mubr.msk.bf16.vlgmr.msra.gmra.mrb[32].mxu0 %vm555_vm6, %v1459_v27 }
0x110d   :  { %2337 = vmatpush3.bf16.msra.mxu0 %v1565_v33  ;;  %2338 = vmatprep.mubr.msk.bf16.mxu0 %vm2520_vm4, %v2519_v14  ;;  %v2090_v33 = vld [vmem:[%s3082_s13 + $0x1] ss:$0 sm:$0xff] }
0x110e   :  { %2348 = vmatprep.subr.bf16.mxu0 %v2519_v14 }
0x1114   :  { %2339 = vmatmul.mubr.msk.bf16.vlgmr.msra.gmra.mrb[36].mxu0 %vm555_vm6, %v1461_v35 }
0x1115   :  { %2352 = vmatprep.mubr.msk.bf16.mxu0 %vm2520_vm4, %v2519_v14  ;;  %2349 = vmatpush3.bf16.msra.mxu0 %v2426_v36 }
0x1116   :  { %2350 = vmatprep.subr.bf16.mxu0 %v2519_v14 }
0x1119   :  { %2351 = vmatpush3.bf16.msra.mxu0 %v2427_v37 }
0x111a   :  { %2364 = vmatprep.subr.bf16.mxu0 %v2519_v14 }
0x11a2   :  { %v1553_v38 = vpop.f32.mrb[40].mxu1 }
0x11a3   :  { %v2334_v23 = vpop.f32.mrb[41].mxu1 }
0x11a4   :  { %v1556_v11 = vpop.f32.mrb[42].mxu1  ;;  %v2431_v23 = vld [vmem:[%s3085_s16 + $0x28] sm:$0xff]  }
0x11a5   :  { %v2335_v12 = vpop.f32.mrb[43].mxu1  ;;  %v2432_v11 = vld [vmem:[%s3085_s16 + $0x30] sm:$0xff]  }
0x11a6   :  { %v2433_v12 = vld [vmem:[%s3085_s16 + $0x38] sm:$0xff]  }
0x11aa   :  { %v1649_v29 = vpop.f32.mrb[44].mxu1 }
0x11ab   :  { %v2409_v39 = vpack.i.bf16 %v1649_v29, %v1553_v38  ;;  %v2346_v40 = vpop.f32.mrb[45].mxu1  ;;  %v2430_v38 = vld [vmem:[%s3085_s16 + $0x20] sm:$0xff]  }
0x11ac   :  { %v1652_v41 = vpop.f32.mrb[46].mxu1  ;;  %v2096_v29 = vld [vmem:[%s3106_s28 + $0x1] ss:$0 sm:$0xff] }
0x11ad   :  { %2410 = vrot.lane.b32.xlu1 %v2409_v39, %s2524_s24  ;;  %v2347_v42 = vpop.f32.mrb[47].mxu1 }
0x11df   :  { %v1505_v43 = vpop.f32.mrb[32].mxu0 }
0x11e0   :  { %v2328_v44 = vpop.f32.mrb[33].mxu0 }
0x11e1   :  { %v1508_v45 = vpop.f32.mrb[34].mxu0 }
0x11e2   :  { %v2329_v46 = vpop.f32.mrb[35].mxu0 }
0x11e7   :  { %v1601_v49 = vpop.f32.mrb[36].mxu0 }
0x11e8   :  { %v2340_v50 = vpop.f32.mrb[37].mxu0 }
0x11e9   :  { %v1604_v51 = vpop.f32.mrb[38].mxu0 }
0x11ea   :  { %v2341_v52 = vpop.f32.mrb[39].mxu0 }
0x121f   :  { %v2411_v53 = vpop.permute.xlu1 %2410 }
0x1220   :  { %v2413_v47 = vunpack.i.h.bf16 %v2411_v53  ;;  %v2412_v54 = vunpack.i.l.bf16 %v2411_v53 }
0x1222   :  { %v1664_v55 = vsel %vm361_vm5, %v1601_v49, %v2413_v47  ;;  %v1659_v56 = vsel %vm361_vm5, %v1505_v43, %v2412_v54 }
0x1223   :  { %v1665_v48 = vpack.c.bf16 %v1664_v55, %v1659_v56 }
0x1225   :  { %2353 = vmatmul.mubr.msk.bf16.vlgmr.msra.gmra.mrb[40].mxu0 %vm220_vm3, %v1665_v48 }
0x1226   :  { %2372 = vmatprep.mubr.msk.bf16.mxu0 %vm2520_vm4, %v2519_v14  ;;  %2365 = vmatpush3.bf16.msra.mxu0 %v2430_v38 }
0x1227   :  { %2366 = vmatprep.subr.bf16.mxu0 %v2519_v14 }
0x122a   :  { %2367 = vmatpush3.bf16.msra.mxu0 %v2431_v23 }
0x122b   :  { %2368 = vmatprep.subr.bf16.mxu0 %v2519_v14 }
0x122e   :  { %2369 = vmatpush3.bf16.msra.mxu0 %v2432_v11 }
0x122f   :  { %2370 = vmatprep.subr.bf16.mxu0 %v2519_v14 }
0x1232   :  { %2371 = vmatpush3.bf16.msra.mxu0 %v2433_v12 }
0x12f8   :  { %v1728_v57 = vpop.f32.mrb[40].mxu0 }
0x12f9   :  { %v1729_v58 = vadd.f32 %v2083_v22, %v1728_v57  ;;  %v2354_v59 = vpop.f32.mrb[41].mxu0 }
0x12fa   :  { %v1731_v60 = vpop.f32.mrb[42].mxu0 }
0x12fb   :  { %v1732_v61 = vadd.f32 %v2083_v22, %v1731_v60  ;;  %v2355_v62 = vpop.f32.mrb[43].mxu0  ;;  %v1735_v1 = vadd.f32 %v1729_v58, %v2892_v63 }
0x12fc   :  { %v2109_v62 = vld [vmem:[%s3086_s17 + $0x1] ss:$0 sm:$0xff] }
0x12fd   :  { %v1741_v2 = vsel %vm220_vm3, %v1735_v1, 0.0  ;;  %v1736_v3 = vadd.f32 %v1732_v61, %v2894_v0  ;;  %v2428_v0 = vld [vmem:[%s3083_s14 + $0x10] sm:$0xff]  }
0x12fe   :  { %1742 = vadd.xlane.f32.xlu0 %v1741_v2  ;;  %2357 = vmatpush3.bf16.msra.mxu1 %v2428_v0 }
0x12ff   :  { %v1744_v4 = vsel %vm220_vm3, %v1736_v3, 0.0  ;;  %2358 = vmatprep.subr.bf16.mxu1 %v2519_v14 }
0x1300   :  { %1745 = vadd.xlane.f32.xlu1 %v1744_v4 }
0x1302   :  { %2359 = vmatpush3.bf16.msra.mxu1 %v2429_v19 }
0x138b   :  { %v1743_v5 = vpop.xlane.xlu0 %1742 }
0x138c   :  { %v1747_v6 = vmul.f32 0.03125, %v1743_v5 }
0x138d   :  { %v1746_v7 = vpop.xlane.xlu1 %1745 }
0x138e   :  { %v1749_v8 = vsub.f32 %v1735_v1, %v1747_v6  ;;  %v1748_v9 = vmul.f32 0.03125, %v1746_v7 }
0x1390   :  { %v1750_v10 = vsub.f32 %v1736_v3, %v1748_v9  ;;  %v1751_v13 = vmul.f32 %v1749_v8, %v1749_v8 }
0x1392   :  { %v1753_v15 = vsel %vm220_vm3, %v1751_v13, 0.0  ;;  %v1752_v18 = vmul.f32 %v1750_v10, %v1750_v10 }
0x1393   :  { %1754 = vadd.xlane.f32.xlu0 %v1753_v15 }
0x1394   :  { %v1756_v63 = vsel %vm220_vm3, %v1752_v18, 0.0 }
0x1397   :  { %1757 = vadd.xlane.f32.xlu0 %v1756_v63 }
0x1420   :  { %v1755_v16 = vpop.xlane.xlu0 %1754 }
0x1421   :  { %v1759_v17 = vmul.f32 0.03125, %v1755_v16 }
0x1423   :  { %v1761_v20 = vadd.f32 1e-12, %v1759_v17 }
0x1424   :  { %v1758_v21 = vpop.xlane.xlu0 %1757 }
0x1425   :  { %2482 = vrsqrt.f32 %v1761_v20  ;;  %v1760_v24 = vmul.f32 0.03125, %v1758_v21 }
0x1427   :  { %v1762_v26 = vadd.f32 1e-12, %v1760_v24 }
0x1429   :  { %2484 = vrsqrt.f32 %v1762_v26 }
0x142f   :  { %v2483_v28 = vpop.eup %2482 }
0x1430   :  { %v1765_v30 = vmul.f32 %v2483_v28, %v1749_v8 }
0x1432   :  { %v1773_v27 = vmul.f32 %v2089_v31, %v1765_v30 }
0x1433   :  { %v2485_v25 = vpop.eup %2484 }
0x1434   :  { %v1766_v32 = vmul.f32 %v2485_v25, %v1750_v10  ;;  %v1781_v35 = vadd.f32 %v2090_v33, %v1773_v27 }
0x1436   :  { %v1774_v34 = vmul.f32 %v2089_v31, %v1766_v32  ;;  %v2117_v32 = vld [vmem:[%s3087_s18 + $0x1] ss:$0 sm:$0xff] }
0x1438   :  { %v1782_v36 = vadd.f32 %v2090_v33, %v1774_v34 }
0x143a   :  { %v1783_v37 = vpack.c.bf16 %v1782_v36, %v1781_v35 }
0x143c   :  { %2361 = vmatmul.mubr.msk.bf16.vlgmr.msra.gmra.mrb[48].mxu1 %vm220_vm3, %v1783_v37 }
0x150f   :  { %v1846_v39 = vpop.f32.mrb[48].mxu1 }
0x1510   :  { %v1847_v40 = vadd.f32 %v2096_v29, %v1846_v39  ;;  %v2362_v41 = vpop.f32.mrb[49].mxu1 }
0x1511   :  { %v1849_v42 = vpop.f32.mrb[50].mxu1 }
0x1512   :  { %v1855_v43 = vmul.f32 0.044715, %v1847_v40  ;;  %v1850_v44 = vadd.f32 %v2096_v29, %v1849_v42  ;;  %v2363_v45 = vpop.f32.mrb[51].mxu1  ;;  %v1853_v22 = vmul.f32 0.5, %v1847_v40 }
0x1514   :  { %v1857_v46 = vmul.f32 %v1855_v43, %v1847_v40  ;;  %v1856_v49 = vmul.f32 0.044715, %v1850_v44  ;;  %v1854_v57 = vmul.f32 0.5, %v1850_v44 }
0x1516   :  { %v1859_v50 = vmul.f32 %v1857_v46, %v1847_v40  ;;  %v1858_v51 = vmul.f32 %v1856_v49, %v1850_v44 }
0x1518   :  { %v1861_v52 = vadd.f32 %v1859_v50, %v1847_v40  ;;  %v1860_v53 = vmul.f32 %v1858_v51, %v1850_v44 }
0x151a   :  { %v1863_v47 = vmul.f32 0.7978846, %v1861_v52  ;;  %v1862_v14 = vadd.f32 %v1860_v53, %v1850_v44 }
0x151c   :  { %2486 = vtanh.f32 %v1863_v47  ;;  %v1864_v54 = vmul.f32 0.7978846, %v1862_v14 }
0x151e   :  { %2488 = vtanh.f32 %v1864_v54 }
0x1526   :  { %v2487_v55 = vpop.eup %2486 }
0x1527   :  { %v1867_v56 = vadd.f32 1.0, %v2487_v55 }
0x1528   :  { %v2489_v48 = vpop.eup %2488 }
0x1529   :  { %v1868_v58 = vadd.f32 1.0, %v2489_v48  ;;  %v1869_v59 = vmul.f32 %v1867_v56, %v1853_v22 }
0x152b   :  { %v1870_v60 = vmul.f32 %v1868_v58, %v1854_v57 }
0x152d   :  { %v1871_v61 = vpack.c.bf16 %v1870_v60, %v1869_v59 }
0x152f   :  { %2373 = vmatmul.mubr.msk.bf16.vlgmr.msra.gmra.mrb[44].mxu0 %vm134_vm0, %v1871_v61 }
0x1602   :  { %v1950_v1 = vpop.f32.mrb[44].mxu0 }
0x1603   :  { %v1951_v2 = vadd.f32 %v2109_v62, %v1950_v1  ;;  %v2374_v3 = vpop.f32.mrb[45].mxu0 }
0x1604   :  { %v1953_v4 = vpop.f32.mrb[46].mxu0 }
0x1605   :  { %v1954_v5 = vadd.f32 %v2109_v62, %v1953_v4  ;;  %v2375_v6 = vpop.f32.mrb[47].mxu0  ;;  %v1957_v7 = vadd.f32 %v1951_v2, %v1781_v35  ;;  %v2118_v35 = vld [vmem:[%s3088_s19 + $0x1] ss:$0 sm:$0xff] }
0x1607   :  { %v1963_v8 = vsel %vm220_vm3, %v1957_v7, 0.0  ;;  %v1958_v9 = vadd.f32 %v1954_v5, %v1782_v36 }
0x1608   :  { %1964 = vadd.xlane.f32.xlu1 %v1963_v8 }
0x1609   :  { %v1966_v10 = vsel %vm220_vm3, %v1958_v9, 0.0 }
0x160a   :  { %1967 = vadd.xlane.f32.xlu0 %v1966_v10 }
0x1695   :  { %v1965_v13 = vpop.xlane.xlu1 %1964 }
0x1696   :  { %v1969_v15 = vmul.f32 0.03125, %v1965_v13 }
0x1697   :  { %v1968_v18 = vpop.xlane.xlu0 %1967 }
0x1698   :  { %v1971_v63 = vsub.f32 %v1957_v7, %v1969_v15  ;;  %v1970_v0 = vmul.f32 0.03125, %v1968_v18 }
0x169a   :  { %v1972_v19 = vsub.f32 %v1958_v9, %v1970_v0  ;;  %v1973_v16 = vmul.f32 %v1971_v63, %v1971_v63 }
0x169c   :  { %v1975_v17 = vsel %vm220_vm3, %v1973_v16, 0.0  ;;  %v1974_v20 = vmul.f32 %v1972_v19, %v1972_v19 }
0x169d   :  { %1976 = vadd.xlane.f32.xlu1 %v1975_v17 }
0x169e   :  { %v1978_v21 = vsel %vm220_vm3, %v1974_v20, 0.0 }
0x169f   :  { %1979 = vadd.xlane.f32.xlu0 %v1978_v21 }
0x172a   :  { %v1977_v24 = vpop.xlane.xlu1 %1976 }
0x172b   :  { %v1981_v26 = vmul.f32 0.03125, %v1977_v24 }
0x172c   :  { %v1980_v28 = vpop.xlane.xlu0 %1979 }
0x172d   :  { %v1983_v30 = vadd.f32 1e-12, %v1981_v26  ;;  %v1982_v31 = vmul.f32 0.03125, %v1980_v28 }
0x172f   :  { %2490 = vrsqrt.f32 %v1983_v30  ;;  %v1984_v25 = vadd.f32 1e-12, %v1982_v31 }
0x1731   :  { %2492 = vrsqrt.f32 %v1984_v25 }
0x1739   :  { %v2491_v27 = vpop.eup %2490 }
0x173a   :  { %v1987_v33 = vmul.f32 %v2491_v27, %v1971_v63 }
0x173b   :  { %v2493_v34 = vpop.eup %2492 }
0x173c   :  { %v1988_v36 = vmul.f32 %v2493_v34, %v1972_v19  ;;  %v1995_v37 = vmul.f32 %v2117_v32, %v1987_v33 }
0x173e   :  { %v1996_v38 = vmul.f32 %v2117_v32, %v1988_v36  ;;  %v2003_v23 = vadd.f32 %v2118_v35, %v1995_v37 }
0x1740   :  { %v2004_v11 = vadd.f32 %v2118_v35, %v1996_v38  ;;  %2005 = vst.msk [vmem:[#allocation2] sm:$0xff] %vm220_vm3, %v2003_v23 }
0x1742   :  { %2006 = vst.msk [vmem:[#allocation2 + $0x8] sm:$0xff] %vm220_vm3, %v2004_v11 }
0x1743   :  { %2505 = shalt.err (!%p2502_p4)
}
0x1744   :  { %s2506_s24 = scalar_lea.hbm %s3089_s20, 256 }
0x1745   :  { %p2507_p5 = scmp.ne.s32.totalorder %s3089_s20, %s2506_s24  ;;  %p2510_p6 = scmp.lt.u32.totalorder %s2506_s24, %s3089_s20 }
0x1747   :  { %p2512_p7 = pnand %p2510_p6, %p2507_p5 }
0x1749   :  { %2515 = shalt.err (!%p2512_p7)
}
0x174a   :  { %s2526_s6 = smov 128   ;;  %s2527_s4 = smov 8  }
0x174b   :  { %2018 = dma.vmem_to_hbm [thread:$0]  %s2013_s0, 256, %s3089_s20, [#allocation3], %s2526_s6, %s2526_s6, %s2527_s4  }
0x174c   :  { %2516 = dma.done.wait [#allocation3], 256  }
0x174d   :  { %2517 = vsyncadd [#allocation3], 4294967040 }
0x174e   :  { %2022 = vsyncpa [#allocation3], 1 }

</bundles_post_ra>
